<compile_context>
chip_gen: v7x
topology: tpu7x:2x2x1
jax: 0.10.0
libtpu: 0.0.40
codegen_flags: <defaults>
</compile_context>

<pallas_src>
import jax
import jax.numpy as jnp
from jax.experimental import pallas as pl
from jax.experimental.pallas import tpu as pltpu

# Logical dims (PyTorch Net.fc_block)
IN_F, HID_F, OUT_F = 784, 526, 10
# Lane-aligned padded dims for the matmul N dims / output store.
HID_P, OUT_P = 640, 128


def _mlp_softmax_kernel(x_ref, w1_ref, b1_ref, w2_ref, b2_ref, out_ref):
    # Hidden layer: (TILE_B, 784)bf16 @ (784, 640)bf16 -> f32 accumulation.
    h = jnp.dot(x_ref[...], w1_ref[...], preferred_element_type=jnp.float32)
    h = jnp.maximum(h + b1_ref[...], 0.0)  # bias + ReLU in f32

    # Output layer: cast activation to bf16 only for the MXU pass.
    logits = jnp.dot(h.astype(jnp.bfloat16), w2_ref[...],
                     preferred_element_type=jnp.float32)
    # Padded logit lanes carry -1e30 via b2 -> exp underflows to exactly 0.
    logits = logits + b2_ref[...]

    # Numerically stable softmax along lanes (dim=1), f32 throughout.
    m = jnp.max(logits, axis=1, keepdims=True)
    e = jnp.exp(logits - m)
    denom = jnp.sum(e, axis=1, keepdims=True)
    # Exact reciprocal: denom is only (TILE_B, 1), so this is essentially free
    # and rows sum to 1 to f32 precision.
    out_ref[...] = e * pl.reciprocal(denom, approx=False)


def prepare_params(w1, b1, w2, b2):
    """One-time weight prep (pad to lane-aligned shapes, bf16 MXU operands).

    w1: (784, 526), b1: (526,), w2: (526, 10), b2: (10,) — weights stored
    transposed as (in_features, out_features).  Call once, reuse the result
    for every net_forward call.
    """
    w1_p = (jnp.zeros((IN_F, HID_P), jnp.float32)
            .at[:, :HID_F].set(w1).astype(jnp.bfloat16))
    b1_p = (jnp.zeros((1, HID_P), jnp.float32)
            .at[:, :HID_F].set(jnp.reshape(b1, (1, HID_F)).astype(jnp.float32)))
    w2_p = (jnp.zeros((HID_P, OUT_P), jnp.float32)
            .at[:HID_F, :OUT_F].set(w2).astype(jnp.bfloat16))
    # Padded logit lanes get -1e30 so the softmax ignores them (f32 bias add).
    b2_p = (jnp.full((1, OUT_P), -1e30, jnp.float32)
            .at[:, :OUT_F].set(jnp.reshape(b2, (1, OUT_F)).astype(jnp.float32)))
    return w1_p, b1_p, w2_p, b2_p


def _choose_tile_b(B: int) -> int:
    """128..1024 rows/step; prefer >=2 grid steps (v7x has 2 TensorCores)."""
    return 128 * max(1, min(8, B // 256))


@jax.jit
def net_forward(x, w1_p, b1_p, w2_p, b2_p):
    """x: (B, 784) f32.  w*_p/b*_p: output of prepare_params()."""
    B = x.shape[0]
    tile_b = _choose_tile_b(B)

    # Single fused cast; no padded f32 intermediate copy of x.
    x_bf = x.astype(jnp.bfloat16)
    B_pad = pl.cdiv(B, tile_b) * tile_b
    if B_pad != B:
        # Cheap bf16 pad on the batch dim only when B isn't a tile multiple.
        x_bf = jnp.pad(x_bf, ((0, B_pad - B), (0, 0)))

    grid = (B_pad // tile_b,)
    out_p = pl.pallas_call(
        _mlp_softmax_kernel,
        out_shape=jax.ShapeDtypeStruct((B_pad, OUT_P), jnp.float32),
        grid=grid,
        in_specs=[
            # x tile: streamed/pipelined over the batch grid axis.
            pl.BlockSpec((tile_b, IN_F), lambda i: (i, 0)),
            # Weights/biases: constant index_maps -> VMEM-resident, DMA'd once.
            pl.BlockSpec((IN_F, HID_P), lambda i: (0, 0)),
            pl.BlockSpec((1, HID_P), lambda i: (0, 0)),
            pl.BlockSpec((HID_P, OUT_P), lambda i: (0, 0)),
            pl.BlockSpec((1, OUT_P), lambda i: (0, 0)),
        ],
        out_specs=pl.BlockSpec((tile_b, OUT_P), lambda i: (i, 0)),
        compiler_params=pltpu.CompilerParams(
            dimension_semantics=("parallel",),
        ),
    )(x_bf, w1_p, b1_p, w2_p, b2_p)

    # Slice away batch padding and the 118 padded output lanes.
    return out_p[:B, :OUT_F]


def init_params(key):
    """Mimics PyTorch nn.Linear default init (uniform ±1/sqrt(fan_in)).
    Weights stored transposed as (in_features, out_features)."""
    k1, k2, k3, k4 = jax.random.split(key, 4)
    bound1 = 1.0 / jnp.sqrt(IN_F)
    bound2 = 1.0 / jnp.sqrt(HID_F)
    w1 = jax.random.uniform(k1, (IN_F, HID_F), jnp.float32, -bound1, bound1)
    b1 = jax.random.uniform(k2, (HID_F,), jnp.float32, -bound1, bound1)
    w2 = jax.random.uniform(k3, (HID_F, OUT_F), jnp.float32, -bound2, bound2)
    b2 = jax.random.uniform(k4, (OUT_F,), jnp.float32, -bound2, bound2)
    return w1, b1, w2, b2


def _ref_forward(x, w1, b1, w2, b2):
    h = jnp.maximum(x @ w1 + b1[None, :], 0.0)
    logits = h @ w2 + b2[None, :]
    return jax.nn.softmax(logits, axis=1)


if __name__ == "__main__":
    key = jax.random.PRNGKey(0)
    k_x, k_p = jax.random.split(key)

    B = 8  # small smoke-test batch (padded to one 128-row tile internally)
    x = jax.random.normal(k_x, (B, IN_F), jnp.float32)
    w1, b1, w2, b2 = init_params(k_p)

    # One-time weight prep, reused across all forward calls.
    w1_p, b1_p, w2_p, b2_p = prepare_params(w1, b1, w2, b2)

    out = net_forward(x, w1_p, b1_p, w2_p, b2_p)
    out = jax.block_until_ready(out)

    assert out.shape == (B, OUT_F)
    # Softmax rows must sum to ~1 (exact reciprocal -> tight).
    row_sums = jnp.sum(out, axis=1)
    assert bool(jnp.all(jnp.abs(row_sums - 1.0) < 1e-4)), row_sums
    # Compare against pure-JAX f32 reference (loose tol for bf16 MXU inputs).
    ref = _ref_forward(x, w1, b1, w2, b2)
    max_err = float(jnp.max(jnp.abs(out - ref)))
    assert max_err < 5e-2, f"max abs err {max_err}"

    # TODO(synk): conv_block (Conv1d(784,512,3) -> Conv1d(512,128,3)) exists in
    # __init__ but is never called in forward(), so it is intentionally omitted.
    print("KERNEL_OK")
</pallas_src>

<mosaic_0001>
module attributes {stable_mosaic.version = 11 : i64} {
  func.func @_mlp_softmax_kernel(%arg0: i32, %arg1: memref<128x784xbf16, #tpu.memory_space<vmem>>, %arg2: memref<784x640xbf16, #tpu.memory_space<vmem>>, %arg3: memref<1x640xf32, #tpu.memory_space<vmem>>, %arg4: memref<640x128xbf16, #tpu.memory_space<vmem>>, %arg5: memref<1x128xf32, #tpu.memory_space<vmem>>, %arg6: memref<128x128xf32, #tpu.memory_space<vmem>>) attributes {dimension_semantics = [#tpu.dimension_semantics<parallel>], iteration_bounds = array<i64: 1>, scalar_prefetch = 0 : i64, scratch_operands = 0 : i64, tpu.core_type = #tpu.core_type<tc>, window_params = [{transform_indices = @transform_0, window_bounds = array<i64: 128, 784>}, {pipeline_mode = #tpu.pipeline_mode<synchronous>, transform_indices = @transform_1, window_bounds = array<i64: 784, 640>}, {pipeline_mode = #tpu.pipeline_mode<synchronous>, transform_indices = @transform_2, window_bounds = array<i64: 1, 640>}, {pipeline_mode = #tpu.pipeline_mode<synchronous>, transform_indices = @transform_3, window_bounds = array<i64: 640, 128>}, {pipeline_mode = #tpu.pipeline_mode<synchronous>, transform_indices = @transform_4, window_bounds = array<i64: 1, 128>}, {transform_indices = @transform_5, window_bounds = array<i64: 128, 128>}]} {
    %c0 = arith.constant 0 : index
    %c0_0 = arith.constant 0 : index
    %0 = vector.load %arg1[%c0, %c0_0] : memref<128x784xbf16, #tpu.memory_space<vmem>>, vector<128x784xbf16>
    %c0_1 = arith.constant 0 : index
    %c0_2 = arith.constant 0 : index
    %1 = vector.load %arg2[%c0_1, %c0_2] : memref<784x640xbf16, #tpu.memory_space<vmem>>, vector<784x640xbf16>
    %cst = arith.constant dense<0.000000e+00> : vector<128x640xf32>
    %2 = tpu.matmul %0, %1, %cst {dimension_numbers = #tpu.dot_dimension_numbers<[1], [0], [0], [1], [0, 0, 1, 1], [], []>} : vector<128x784xbf16>, vector<784x640xbf16>, vector<128x640xf32> -> vector<128x640xf32>
    %c0_3 = arith.constant 0 : index
    %c0_4 = arith.constant 0 : index
    %3 = vector.load %arg3[%c0_3, %c0_4] : memref<1x640xf32, #tpu.memory_space<vmem>>, vector<1x640xf32>
    %4 = vector.broadcast %3 : vector<1x640xf32> to vector<128x640xf32>
    %5 = arith.addf %2, %4 : vector<128x640xf32>
    %cst_5 = arith.constant 0.000000e+00 : f32
    %6 = vector.broadcast %cst_5 : f32 to vector<128x640xf32>
    %7 = arith.maximumf %5, %6 : vector<128x640xf32>
    %8 = arith.truncf %7 : vector<128x640xf32> to vector<128x640xbf16>
    %c0_6 = arith.constant 0 : index
    %c0_7 = arith.constant 0 : index
    %9 = vector.load %arg4[%c0_6, %c0_7] : memref<640x128xbf16, #tpu.memory_space<vmem>>, vector<640x128xbf16>
    %cst_8 = arith.constant dense<0.000000e+00> : vector<128x128xf32>
    %10 = tpu.matmul %8, %9, %cst_8 {dimension_numbers = #tpu.dot_dimension_numbers<[1], [0], [0], [1], [0, 0, 1, 1], [], []>} : vector<128x640xbf16>, vector<640x128xbf16>, vector<128x128xf32> -> vector<128x128xf32>
    %c0_9 = arith.constant 0 : index
    %c0_10 = arith.constant 0 : index
    %11 = vector.load %arg5[%c0_9, %c0_10] : memref<1x128xf32, #tpu.memory_space<vmem>>, vector<1x128xf32>
    %12 = vector.broadcast %11 : vector<1x128xf32> to vector<128x128xf32>
    %13 = arith.addf %10, %12 : vector<128x128xf32>
    %cst_11 = arith.constant dense<0xFF800000> : vector<128xf32>
    %14 = vector.multi_reduction <maximumf>, %13, %cst_11 [1] : vector<128x128xf32> to vector<128xf32>
    %15 = vector.shape_cast %14 : vector<128xf32> to vector<128x1xf32>
    %16 = vector.broadcast %15 : vector<128x1xf32> to vector<128x128xf32>
    %17 = arith.subf %13, %16 : vector<128x128xf32>
    %18 = math.exp %17 : vector<128x128xf32>
    %cst_12 = arith.constant dense<0.000000e+00> : vector<128xf32>
    %19 = vector.multi_reduction <add>, %18, %cst_12 [1] : vector<128x128xf32> to vector<128xf32>
    %20 = vector.shape_cast %19 : vector<128xf32> to vector<128x1xf32>
    %21 = tpu.reciprocal %20 : vector<128x1xf32> -> vector<128x1xf32>
    %22 = vector.broadcast %21 : vector<128x1xf32> to vector<128x128xf32>
    %23 = arith.mulf %18, %22 : vector<128x128xf32>
    %c0_13 = arith.constant 0 : index
    %c0_14 = arith.constant 0 : index
    %24 = vector.load %arg6[%c0_13, %c0_14] : memref<128x128xf32, #tpu.memory_space<vmem>>, vector<128x128xf32>
    tpu.vector_store %arg6[%c0_13, %c0_14], %23 {strides = array<i32>} : memref<128x128xf32, #tpu.memory_space<vmem>>, vector<128x128xf32>,
    return
  }
  func.func @transform_0(%arg0: i32) -> (i32, i32) {
    %c0_i32 = arith.constant 0 : i32
    %c0_i32_0 = arith.constant 0 : i32
    return %arg0, %c0_i32 : i32, i32
  }
  func.func @transform_1(%arg0: i32) -> (i32, i32) {
    %c0_i32 = arith.constant 0 : i32
    %c0_i32_0 = arith.constant 0 : i32
    %c0_i32_1 = arith.constant 0 : i32
    return %c0_i32, %c0_i32_0 : i32, i32
  }
  func.func @transform_2(%arg0: i32) -> (i32, i32) {
    %c0_i32 = arith.constant 0 : i32
    %c0_i32_0 = arith.constant 0 : i32
    %c0_i32_1 = arith.constant 0 : i32
    return %c0_i32, %c0_i32_0 : i32, i32
  }
  func.func @transform_3(%arg0: i32) -> (i32, i32) {
    %c0_i32 = arith.constant 0 : i32
    %c0_i32_0 = arith.constant 0 : i32
    %c0_i32_1 = arith.constant 0 : i32
    return %c0_i32, %c0_i32_0 : i32, i32
  }
  func.func @transform_4(%arg0: i32) -> (i32, i32) {
    %c0_i32 = arith.constant 0 : i32
    %c0_i32_0 = arith.constant 0 : i32
    %c0_i32_1 = arith.constant 0 : i32
    return %c0_i32, %c0_i32_0 : i32, i32
  }
  func.func @transform_5(%arg0: i32) -> (i32, i32) {
    %c0_i32 = arith.constant 0 : i32
    %c0_i32_0 = arith.constant 0 : i32
    return %arg0, %c0_i32 : i32, i32
  }
}

</mosaic_0001>

<bundles_post_ra>
// kernel: net_forward.1
= control target key start
LH: loop header
LB: loop body
LE: loop exit
PB: predicated region body
PF: predicated region fallthrough
CT: control target
= control target key end

     0   :  { %10 = vsyncpa [#allocation3], 0  ;;  %s5791_s18 = smov [#allocation2]   ;;  %s6759_s0 = inlined_call_operand.vmem [shape: bf16[128,784], index: 0, kind: input, shape index: {}]   ;;  %s6760_s1 = inlined_call_operand.hbm [shape: bf16[784,640], index: 1, kind: input, shape index: {}]   ;;  %s6761_s2 = inlined_call_operand.vmem [shape: f32[1,640], index: 2, kind: input, shape index: {}]   ;;  %s6762_s3 = inlined_call_operand.vmem [shape: bf16[640,128], index: 3, kind: input, shape index: {}]   ;;  %s6763_s4 = inlined_call_operand.vmem [shape: f32[1,128], index: 4, kind: input, shape index: {}]   ;;  %s6764_s5 = inlined_call_operand.vmem [shape: f32[128,128], index: 5, kind: output, shape index: {}]  }
   0x1   :  { %s18_s19 = sshll.u32 %s5791_s18, 4  ;;  %s5767_s22 = scalar_lea.hbm %s6760_s1, 31360  ;;  %s19_s19 = int_to_ptr.vmem [resolvable:$true] %s18_s19 }
   0x2   :  { %p5768_p0 = scmp.ne.s32.totalorder %s6760_s1, %s5767_s22  ;;  %p5771_p1 = scmp.lt.u32.totalorder %s5767_s22, %s6760_s1 }
   0x4   :  { %p5773_p2 = pnand %p5771_p1, %p5768_p0 }
   0x6   :  { %5776 = shalt.err (!%p5773_p2)
}
   0x7   :  { %s5777_s27 = scalar_lea.vmem %s19_s19, 31360  ;;  %p5782_p4 = scmp.lt.s32.totalorder %s19_s19, %s19_s19 }
   0x8   :  { %p5778_p3 = scmp.ne.s32.totalorder %s19_s19, %s5777_s27  ;;  %p5783_p5 = scmp.lt.s32.totalorder %s5777_s27, %s5777_s27 }
   0xa   :  { %p5784_p6 = por %p5783_p5, %p5782_p4 }
   0xc   :  { %p5785_p7 = pnand %p5784_p6, %p5778_p3 }
   0xe   :  { %5788 = shalt.err (!%p5785_p7)
}
   0xf   :  { %s5792_s28 = smov 320   ;;  %s5793_s29 = smov 20  }
  0x10   :  { %24 = dma.hbm_to_vmem [thread:$0]  %s6760_s1, 31360, %s19_s19, [#allocation3], %s5792_s28, %s5792_s28, %s5793_s29  }
  0x11   :  { %5789 = dma.done.wait [#allocation3], 31360  }
  0x12   :  { %5790 = vsyncadd [#allocation3], 4294935936  ;;  %v5215_v0 = vld [vmem:[#allocation2 + $0x4] ss:$20 sps:$4 sm:$0xff]   ;;  %v5217_v1 = vld [vmem:[#allocation2 + $0xc] ss:$20 sps:$4 sm:$0xff]  }
  0x13   :  { %1999 = vmatprep.subr.bf16.mxu0 %v5215_v0  ;;  %v5219_v2 = vld [vmem:[#allocation2] ss:$20 sps:$4 sm:$0xff]   ;;  %v5220_v3 = vld [vmem:[#allocation2 + $0x8] ss:$20 sps:$4 sm:$0xff]   ;;  %2451 = vmatprep.subr.bf16.mxu1 %v5217_v1  ;;  %v5226_v7 = vld [vmem:[#allocation2 + $0x30] ss:$20 sps:$4 sm:$0xff]  }
  0x14   :  { %v5221_v4 = vld [vmem:[#allocation2 + $0x2c] ss:$20 sps:$4 sm:$0xff]   ;;  %2000 = vmatpush1.bf16.msra.mxu0 %v5219_v2  ;;  %2452 = vmatpush1.bf16.msra.mxu1 %v5220_v3  ;;  %v5223_v5 = vld [vmem:[#allocation2 + $0x34] ss:$20 sps:$4 sm:$0xff]   ;;  %v5229_v9 = vld [vmem:[#allocation2 + $0x5c] ss:$20 sps:$4 sm:$0xff]  }
  0x15   :  { %v5225_v6 = vld [vmem:[#allocation2 + $0x28] ss:$20 sps:$4 sm:$0xff]   ;;  %2001 = vmatprep.subr.bf16.mxu0 %v5221_v4  ;;  %2453 = vmatprep.subr.bf16.mxu1 %v5223_v5  ;;  %v5231_v10 = vld [vmem:[#allocation2 + $0x50] ss:$20 sps:$4 sm:$0xff]   ;;  %v5232_v11 = vld [vmem:[#allocation2 + $0x58] ss:$20 sps:$4 sm:$0xff]  }
  0x16   :  { %v5227_v8 = vld [vmem:[#allocation2 + $0x54] ss:$20 sps:$4 sm:$0xff]   ;;  %v5233_v12 = vld [vmem:[#allocation2 + $0x7c] ss:$20 sps:$4 sm:$0xff]   ;;  %v5235_v13 = vld [vmem:[#allocation2 + $0x84] ss:$20 sps:$4 sm:$0xff]  }
  0x17   :  { %v5237_v14 = vld [vmem:[#allocation2 + $0x78] ss:$20 sps:$4 sm:$0xff]   ;;  %v5238_v15 = vld [vmem:[#allocation2 + $0x80] ss:$20 sps:$4 sm:$0xff]   ;;  %v5244_v19 = vld [vmem:[#allocation2 + $0xa8] ss:$20 sps:$4 sm:$0xff]  }
  0x18   :  { %2002 = vmatpush1.bf16.msra.mxu0 %v5225_v6  ;;  %2454 = vmatpush1.bf16.msra.mxu1 %v5226_v7  ;;  %v5239_v16 = vld [vmem:[#allocation2 + $0xa4] ss:$20 sps:$4 sm:$0xff]   ;;  %v5241_v17 = vld [vmem:[#allocation2 + $0xac] ss:$20 sps:$4 sm:$0xff]   ;;  %v5247_v21 = vld [vmem:[#allocation2 + $0xd4] ss:$20 sps:$4 sm:$0xff]  }
  0x19   :  { %2003 = vmatprep.subr.bf16.mxu0 %v5227_v8  ;;  %2455 = vmatprep.subr.bf16.mxu1 %v5229_v9  ;;  %v5243_v18 = vld [vmem:[#allocation2 + $0xa0] ss:$20 sps:$4 sm:$0xff]   ;;  %v5249_v22 = vld [vmem:[#allocation2 + $0xc8] ss:$20 sps:$4 sm:$0xff]   ;;  %v5250_v23 = vld [vmem:[#allocation2 + $0xd0] ss:$20 sps:$4 sm:$0xff]  }
  0x1a   :  { %v5245_v20 = vld [vmem:[#allocation2 + $0xcc] ss:$20 sps:$4 sm:$0xff]   ;;  %v5251_v24 = vld [vmem:[#allocation2 + $0xf4] ss:$20 sps:$4 sm:$0xff]   ;;  %v5253_v25 = vld [vmem:[#allocation2 + $0xfc] ss:$20 sps:$4 sm:$0xff]  }
  0x1b   :  { %v5255_v26 = vld [vmem:[#allocation2 + $0xf0] ss:$20 sps:$4 sm:$0xff]   ;;  %v5256_v27 = vld [vmem:[#allocation2 + $0xf8] ss:$20 sps:$4 sm:$0xff]   ;;  %v5262_v31 = vld [vmem:[#allocation2 + $0x120] ss:$20 sps:$4 sm:$0xff]  }
  0x1c   :  { %2004 = vmatpush1.bf16.msra.mxu0 %v5231_v10  ;;  %2456 = vmatpush1.bf16.msra.mxu1 %v5232_v11  ;;  %v5257_v28 = vld [vmem:[#allocation2 + $0x11c] ss:$20 sps:$4 sm:$0xff]   ;;  %v5259_v29 = vld [vmem:[#allocation2 + $0x124] ss:$20 sps:$4 sm:$0xff]   ;;  %v5265_v33 = vld [vmem:[#allocation2 + $0x14c] ss:$20 sps:$4 sm:$0xff]  }
  0x1d   :  { %2005 = vmatprep.subr.bf16.mxu0 %v5233_v12  ;;  %2457 = vmatprep.subr.bf16.mxu1 %v5235_v13  ;;  %v5261_v30 = vld [vmem:[#allocation2 + $0x118] ss:$20 sps:$4 sm:$0xff]   ;;  %v5267_v34 = vld [vmem:[#allocation2 + $0x140] ss:$20 sps:$4 sm:$0xff]   ;;  %v5268_v35 = vld [vmem:[#allocation2 + $0x148] ss:$20 sps:$4 sm:$0xff]  }
  0x1e   :  { %v5263_v32 = vld [vmem:[#allocation2 + $0x144] ss:$20 sps:$4 sm:$0xff]   ;;  %v5269_v36 = vld [vmem:[#allocation2 + $0x16c] ss:$20 sps:$4 sm:$0xff]   ;;  %v5271_v37 = vld [vmem:[#allocation2 + $0x174] ss:$20 sps:$4 sm:$0xff]  }
  0x1f   :  { %v5273_v38 = vld [vmem:[#allocation2 + $0x168] ss:$20 sps:$4 sm:$0xff]   ;;  %v5274_v39 = vld [vmem:[#allocation2 + $0x170] ss:$20 sps:$4 sm:$0xff]   ;;  %v5280_v43 = vld [vmem:[#allocation2 + $0x198] ss:$20 sps:$4 sm:$0xff]  }
  0x20   :  { %2006 = vmatpush1.bf16.msra.mxu0 %v5237_v14  ;;  %2458 = vmatpush1.bf16.msra.mxu1 %v5238_v15  ;;  %v5275_v40 = vld [vmem:[#allocation2 + $0x194] ss:$20 sps:$4 sm:$0xff]   ;;  %v5277_v41 = vld [vmem:[#allocation2 + $0x19c] ss:$20 sps:$4 sm:$0xff]   ;;  %v5283_v45 = vld [vmem:[#allocation2 + $0x1c4] ss:$20 sps:$4 sm:$0xff]  }
  0x21   :  { %2007 = vmatprep.subr.bf16.mxu0 %v5239_v16  ;;  %2459 = vmatprep.subr.bf16.mxu1 %v5241_v17  ;;  %v5279_v42 = vld [vmem:[#allocation2 + $0x190] ss:$20 sps:$4 sm:$0xff]   ;;  %v5285_v46 = vld [vmem:[#allocation2 + $0x1b8] ss:$20 sps:$4 sm:$0xff]   ;;  %v5286_v47 = vld [vmem:[#allocation2 + $0x1c0] ss:$20 sps:$4 sm:$0xff]  }
  0x22   :  { %v5281_v44 = vld [vmem:[#allocation2 + $0x1bc] ss:$20 sps:$4 sm:$0xff]   ;;  %v5311_v48 = vld [vmem:[%s6759_s0 + $0x4] ss:$28 sps:$4 sm:$0xff]   ;;  %v5295_v54 = vld [vmem:[#allocation2 + $0x214] ss:$20 sps:$4 sm:$0xff]  }
  0x23   :  { %v5287_v49 = vld [vmem:[#allocation2 + $0x1e4] ss:$20 sps:$4 sm:$0xff]   ;;  %v5289_v50 = vld [vmem:[#allocation2 + $0x1ec] ss:$20 sps:$4 sm:$0xff]   ;;  %2031 = vmatprep.mubr.bf16.mxu0 %v5311_v48  ;;  %2483 = vmatprep.mubr.bf16.mxu1 %v5311_v48  ;;  %v5292_v52 = vld [vmem:[#allocation2 + $0x1e8] ss:$20 sps:$4 sm:$0xff]  }
  0x24   :  { %2008 = vmatpush1.bf16.msra.mxu0 %v5243_v18  ;;  %2460 = vmatpush1.bf16.msra.mxu1 %v5244_v19  ;;  %v5291_v51 = vld [vmem:[#allocation2 + $0x1e0] ss:$20 sps:$4 sm:$0xff]   ;;  %v5297_v55 = vld [vmem:[#allocation2 + $0x208] ss:$20 sps:$4 sm:$0xff]   ;;  %v5298_v56 = vld [vmem:[#allocation2 + $0x210] ss:$20 sps:$4 sm:$0xff]  }
  0x25   :  { %2009 = vmatprep.subr.bf16.mxu0 %v5245_v20  ;;  %2461 = vmatprep.subr.bf16.mxu1 %v5247_v21  ;;  %v5293_v53 = vld [vmem:[#allocation2 + $0x20c] ss:$20 sps:$4 sm:$0xff]   ;;  %v5299_v57 = vld [vmem:[#allocation2 + $0x234] ss:$20 sps:$4 sm:$0xff]   ;;  %v5301_v58 = vld [vmem:[#allocation2 + $0x23c] ss:$20 sps:$4 sm:$0xff]  }
  0x26   :  { %v5303_v59 = vld [vmem:[#allocation2 + $0x230] ss:$20 sps:$4 sm:$0xff]   ;;  %v5304_v60 = vld [vmem:[#allocation2 + $0x238] ss:$20 sps:$4 sm:$0xff]   ;;  %v5310_v0 = vld [vmem:[#allocation2 + $0x260] ss:$20 sps:$4 sm:$0xff]  }
  0x27   :  { %v5305_v61 = vld [vmem:[#allocation2 + $0x25c] ss:$20 sps:$4 sm:$0xff]   ;;  %v5307_v62 = vld [vmem:[#allocation2 + $0x264] ss:$20 sps:$4 sm:$0xff]   ;;  %v5319_v2 = vld [vmem:[#allocation2 + $0x28c] ss:$20 sps:$4 sm:$0xff]  }
  0x28   :  { %2010 = vmatpush1.bf16.msra.mxu0 %v5249_v22  ;;  %2462 = vmatpush1.bf16.msra.mxu1 %v5250_v23  ;;  %v5309_v63 = vld [vmem:[#allocation2 + $0x258] ss:$20 sps:$4 sm:$0xff]   ;;  %v5313_v3 = vld [vmem:[%s6759_s0] ss:$28 sps:$4 sm:$0xff]   ;;  %v5325_v7 = vld [vmem:[#allocation2 + $0x2b4] ss:$20 sps:$4 sm:$0xff]  }
  0x29   :  { %2011 = vmatprep.subr.bf16.mxu0 %v5251_v24  ;;  %2463 = vmatprep.subr.bf16.mxu1 %v5253_v25  ;;  %v5316_v1 = vld [vmem:[#allocation2 + $0x284] ss:$20 sps:$4 sm:$0xff]   ;;  %v5314_v4 = vld [vmem:[#allocation2 + $0x280] ss:$20 sps:$4 sm:$0xff]   ;;  %v5317_v5 = vld [vmem:[#allocation2 + $0x288] ss:$20 sps:$4 sm:$0xff]  }
  0x2a   :  { %v5322_v6 = vld [vmem:[#allocation2 + $0x2ac] ss:$20 sps:$4 sm:$0xff]   ;;  %v5326_v8 = vld [vmem:[%s6759_s0 + $0x3c] ss:$28 sps:$4 sm:$0xff]   ;;  %v5323_v10 = vld [vmem:[#allocation2 + $0x2b0] ss:$20 sps:$4 sm:$0xff]  }
  0x2b   :  { %v5320_v9 = vld [vmem:[#allocation2 + $0x2a8] ss:$20 sps:$4 sm:$0xff]   ;;  %v5328_v13 = vld [vmem:[%s6759_s0 + $0x38] ss:$28 sps:$4 sm:$0xff]   ;;  %v5329_v14 = vld [vmem:[#allocation2 + $0x2d0] ss:$20 sps:$4 sm:$0xff]  }
  0x2c   :  { %2012 = vmatpush1.bf16.msra.mxu0 %v5255_v26  ;;  %2464 = vmatpush1.bf16.msra.mxu1 %v5256_v27  ;;  %v5331_v11 = vld [vmem:[#allocation2 + $0x2d4] ss:$20 sps:$4 sm:$0xff]   ;;  %v5334_v12 = vld [vmem:[#allocation2 + $0x2dc] ss:$20 sps:$4 sm:$0xff]   ;;  %v5332_v15 = vld [vmem:[#allocation2 + $0x2d8] ss:$20 sps:$4 sm:$0xff]  }
  0x2d   :  { %2013 = vmatprep.subr.bf16.mxu0 %v5257_v28  ;;  %2465 = vmatprep.subr.bf16.mxu1 %v5259_v29  ;;  %v5337_v16 = vld [vmem:[#allocation2 + $0x2fc] ss:$20 sps:$4 sm:$0xff]   ;;  %v5340_v17 = vld [vmem:[#allocation2 + $0x304] ss:$20 sps:$4 sm:$0xff]   ;;  %v5338_v20 = vld [vmem:[#allocation2 + $0x300] ss:$20 sps:$4 sm:$0xff]  }
  0x2e   :  { %v5341_v18 = vld [vmem:[%s6759_s0 + $0x74] ss:$28 sps:$4 sm:$0xff]   ;;  %v5335_v19 = vld [vmem:[#allocation2 + $0x2f8] ss:$20 sps:$4 sm:$0xff]   ;;  %v5347_v25 = vld [vmem:[#allocation2 + $0x328] ss:$20 sps:$4 sm:$0xff]  }
  0x2f   :  { %v5346_v21 = vld [vmem:[#allocation2 + $0x324] ss:$20 sps:$4 sm:$0xff]   ;;  %v5349_v22 = vld [vmem:[#allocation2 + $0x32c] ss:$20 sps:$4 sm:$0xff]   ;;  %v5355_v27 = vld [vmem:[#allocation2 + $0x354] ss:$20 sps:$4 sm:$0xff]  }
  0x30   :  { %2014 = vmatpush1.bf16.msra.mxu0 %v5261_v30  ;;  %2466 = vmatpush1.bf16.msra.mxu1 %v5262_v31  ;;  %v5343_v23 = vld [vmem:[%s6759_s0 + $0x70] ss:$28 sps:$4 sm:$0xff]   ;;  %v5344_v24 = vld [vmem:[#allocation2 + $0x320] ss:$20 sps:$4 sm:$0xff]   ;;  %v5350_v29 = vld [vmem:[#allocation2 + $0x348] ss:$20 sps:$4 sm:$0xff]  }
  0x31   :  { %2015 = vmatprep.subr.bf16.mxu0 %v5263_v32  ;;  %2467 = vmatprep.subr.bf16.mxu1 %v5265_v33  ;;  %v5352_v26 = vld [vmem:[#allocation2 + $0x34c] ss:$20 sps:$4 sm:$0xff]   ;;  %v5353_v30 = vld [vmem:[#allocation2 + $0x350] ss:$20 sps:$4 sm:$0xff]   ;;  %v5361_v31 = vld [vmem:[#allocation2 + $0x374] ss:$20 sps:$4 sm:$0xff]  }
  0x32   :  { %v5356_v28 = vld [vmem:[%s6759_s0 + $0xac] ss:$28 sps:$4 sm:$0xff]   ;;  %v5364_v32 = vld [vmem:[#allocation2 + $0x37c] ss:$20 sps:$4 sm:$0xff]   ;;  %vm1974_vm0 = vcmask 130048  }
  0x33   :  { %v5358_v33 = vld [vmem:[%s6759_s0 + $0xa8] ss:$28 sps:$4 sm:$0xff]   ;;  %v5386_v48 = vld [vmem:[%s6759_s0 + $0x11c] ss:$28 sps:$4 sm:$0xff]  }
  0x34   :  { %2016 = vmatpush1.bf16.msra.mxu0 %v5267_v34  ;;  %2468 = vmatpush1.bf16.msra.mxu1 %v5268_v35  ;;  %v5359_v34 = vld [vmem:[#allocation2 + $0x370] ss:$20 sps:$4 sm:$0xff]   ;;  %v5362_v35 = vld [vmem:[#allocation2 + $0x378] ss:$20 sps:$4 sm:$0xff]  }
  0x35   :  { %2017 = vmatprep.subr.bf16.mxu0 %v5269_v36  ;;  %2469 = vmatprep.subr.bf16.mxu1 %v5271_v37  ;;  %v5367_v36 = vld [vmem:[#allocation2 + $0x39c] ss:$20 sps:$4 sm:$0xff]   ;;  %v5370_v37 = vld [vmem:[#allocation2 + $0x3a4] ss:$20 sps:$4 sm:$0xff]  }
  0x38   :  { %2018 = vmatpush1.bf16.msra.mxu0 %v5273_v38  ;;  %2470 = vmatpush1.bf16.msra.mxu1 %v5274_v39  ;;  %v5371_v38 = vld [vmem:[%s6759_s0 + $0xe4] ss:$28 sps:$4 sm:$0xff]   ;;  %v5365_v39 = vld [vmem:[#allocation2 + $0x398] ss:$20 sps:$4 sm:$0xff]  }
  0x39   :  { %2019 = vmatprep.subr.bf16.mxu0 %v5275_v40  ;;  %2471 = vmatprep.subr.bf16.mxu1 %v5277_v41  ;;  %v5368_v40 = vld [vmem:[#allocation2 + $0x3a0] ss:$20 sps:$4 sm:$0xff]   ;;  %v5376_v41 = vld [vmem:[#allocation2 + $0x3c4] ss:$20 sps:$4 sm:$0xff]  }
  0x3c   :  { %2020 = vmatpush1.bf16.msra.mxu0 %v5279_v42  ;;  %2472 = vmatpush1.bf16.msra.mxu1 %v5280_v43  ;;  %v5379_v42 = vld [vmem:[#allocation2 + $0x3cc] ss:$20 sps:$4 sm:$0xff]  }
  0x3d   :  { %2021 = vmatprep.subr.bf16.mxu0 %v5281_v44  ;;  %2473 = vmatprep.subr.bf16.mxu1 %v5283_v45  ;;  %v5373_v43 = vld [vmem:[%s6759_s0 + $0xe0] ss:$28 sps:$4 sm:$0xff]  }
  0x3e   :  { %v5374_v44 = vld [vmem:[#allocation2 + $0x3c0] ss:$20 sps:$4 sm:$0xff]   ;;  %v5377_v45 = vld [vmem:[#allocation2 + $0x3c8] ss:$20 sps:$4 sm:$0xff]  }
  0x40   :  { %2022 = vmatpush1.bf16.msra.mxu0 %v5285_v46  ;;  %2474 = vmatpush1.bf16.msra.mxu1 %v5286_v47  ;;  %v5382_v46 = vld [vmem:[#allocation2 + $0x3ec] ss:$20 sps:$4 sm:$0xff]   ;;  %v5385_v47 = vld [vmem:[#allocation2 + $0x3f4] ss:$20 sps:$4 sm:$0xff]  }
  0x41   :  { %2023 = vmatprep.subr.bf16.mxu0 %v5287_v49  ;;  %2475 = vmatprep.subr.bf16.mxu1 %v5289_v50  ;;  %v5380_v49 = vld [vmem:[#allocation2 + $0x3e8] ss:$20 sps:$4 sm:$0xff]   ;;  %v5383_v50 = vld [vmem:[#allocation2 + $0x3f0] ss:$20 sps:$4 sm:$0xff]  }
  0x44   :  { %2024 = vmatpush1.bf16.msra.mxu0 %v5291_v51  ;;  %2476 = vmatpush1.bf16.msra.mxu1 %v5292_v52  ;;  %v5391_v51 = vld [vmem:[#allocation2 + $0x414] ss:$20 sps:$4 sm:$0xff]   ;;  %v5394_v52 = vld [vmem:[#allocation2 + $0x41c] ss:$20 sps:$4 sm:$0xff]  }
  0x45   :  { %2025 = vmatprep.subr.bf16.mxu0 %v5293_v53  ;;  %2477 = vmatprep.subr.bf16.mxu1 %v5295_v54  ;;  %v5388_v53 = vld [vmem:[%s6759_s0 + $0x118] ss:$28 sps:$4 sm:$0xff]   ;;  %v5389_v54 = vld [vmem:[#allocation2 + $0x410] ss:$20 sps:$4 sm:$0xff]  }
  0x48   :  { %2026 = vmatpush1.bf16.msra.mxu0 %v5297_v55  ;;  %2478 = vmatpush1.bf16.msra.mxu1 %v5298_v56  ;;  %v5392_v55 = vld [vmem:[#allocation2 + $0x418] ss:$20 sps:$4 sm:$0xff]   ;;  %v5397_v56 = vld [vmem:[#allocation2 + $0x43c] ss:$20 sps:$4 sm:$0xff]  }
  0x49   :  { %2027 = vmatprep.subr.bf16.mxu0 %v5299_v57  ;;  %2479 = vmatprep.subr.bf16.mxu1 %v5301_v58  ;;  %v5400_v57 = vld [vmem:[#allocation2 + $0x444] ss:$20 sps:$4 sm:$0xff]   ;;  %v5401_v58 = vld [vmem:[%s6759_s0 + $0x154] ss:$28 sps:$4 sm:$0xff]  }
  0x4c   :  { %2028 = vmatpush1.bf16.msra.mxu0 %v5303_v59  ;;  %2480 = vmatpush1.bf16.msra.mxu1 %v5304_v60  ;;  %v5395_v59 = vld [vmem:[#allocation2 + $0x438] ss:$20 sps:$4 sm:$0xff]   ;;  %v5398_v60 = vld [vmem:[#allocation2 + $0x440] ss:$20 sps:$4 sm:$0xff]  }
  0x4d   :  { %2029 = vmatprep.subr.bf16.mxu0 %v5305_v61  ;;  %2481 = vmatprep.subr.bf16.mxu1 %v5307_v62  ;;  %v5406_v61 = vld [vmem:[#allocation2 + $0x464] ss:$20 sps:$4 sm:$0xff]   ;;  %v5409_v62 = vld [vmem:[#allocation2 + $0x46c] ss:$20 sps:$4 sm:$0xff]  }
  0x50   :  { %2030 = vmatpush1.bf16.msra.mxu0 %v5309_v63  ;;  %2482 = vmatpush1.bf16.msra.mxu1 %v5310_v0  ;;  %v5403_v63 = vld [vmem:[%s6759_s0 + $0x150] ss:$28 sps:$4 sm:$0xff]   ;;  %v5404_v0 = vld [vmem:[#allocation2 + $0x460] ss:$20 sps:$4 sm:$0xff]  }
  0x51   :  { %2112 = vmatprep.subr.bf16.mxu0 %v5316_v1  ;;  %2564 = vmatprep.subr.bf16.mxu1 %v5319_v2  ;;  %v5407_v1 = vld [vmem:[#allocation2 + $0x468] ss:$20 sps:$4 sm:$0xff]   ;;  %v5412_v2 = vld [vmem:[#allocation2 + $0x48c] ss:$20 sps:$4 sm:$0xff]  }
  0x53   :  { %2032 = vmatmul.mubr.bf16.vlgmr.msra.gmra.mrb[0].mxu0 %v5313_v3  ;;  %2484 = vmatmul.mubr.bf16.vlgmr.msra.gmra.mrb[0].mxu1 %v5313_v3  ;;  %v5415_v3 = vld [vmem:[#allocation2 + $0x494] ss:$20 sps:$4 sm:$0xff]  }
  0x54   :  { %2113 = vmatpush1.bf16.msra.mxu0 %v5314_v4  ;;  %2565 = vmatpush1.bf16.msra.mxu1 %v5317_v5  ;;  %v5416_v4 = vld [vmem:[%s6759_s0 + $0x18c] ss:$28 sps:$4 sm:$0xff]  }
  0x55   :  { %2114 = vmatprep.subr.bf16.mxu0 %v5322_v6  ;;  %2566 = vmatprep.subr.bf16.mxu1 %v5325_v7  ;;  %v5410_v5 = vld [vmem:[#allocation2 + $0x488] ss:$20 sps:$4 sm:$0xff]   ;;  %v5413_v6 = vld [vmem:[#allocation2 + $0x490] ss:$20 sps:$4 sm:$0xff]  }
  0x56   :  { %2041 = vmatprep.mubr.bf16.mxu0 %v5326_v8  ;;  %2493 = vmatprep.mubr.bf16.mxu1 %v5326_v8  ;;  %v5421_v7 = vld [vmem:[#allocation2 + $0x4b4] ss:$20 sps:$4 sm:$0xff]   ;;  %v5424_v8 = vld [vmem:[#allocation2 + $0x4bc] ss:$20 sps:$4 sm:$0xff]  }
  0x58   :  { %2115 = vmatpush1.bf16.msra.mxu0 %v5320_v9  ;;  %2567 = vmatpush1.bf16.msra.mxu1 %v5323_v10  ;;  %v5418_v9 = vld [vmem:[%s6759_s0 + $0x188] ss:$28 sps:$4 sm:$0xff]  }
  0x59   :  { %2116 = vmatprep.subr.bf16.mxu0 %v5331_v11  ;;  %2568 = vmatprep.subr.bf16.mxu1 %v5334_v12  ;;  %v5419_v10 = vld [vmem:[#allocation2 + $0x4b0] ss:$20 sps:$4 sm:$0xff]   ;;  %v5422_v11 = vld [vmem:[#allocation2 + $0x4b8] ss:$20 sps:$4 sm:$0xff]  }
  0x5a   :  { %v5427_v12 = vld [vmem:[#allocation2 + $0x4dc] ss:$20 sps:$4 sm:$0xff]  }
  0x5b   :  { %2042 = vmatmul.mubr.bf16.gmra.mrb[4].mxu0 %v5328_v13  ;;  %2494 = vmatmul.mubr.bf16.gmra.mrb[4].mxu1 %v5328_v13  ;;  %v5430_v13 = vld [vmem:[#allocation2 + $0x4e4] ss:$20 sps:$4 sm:$0xff]  }
  0x5c   :  { %2117 = vmatpush1.bf16.msra.mxu0 %v5329_v14  ;;  %2569 = vmatpush1.bf16.msra.mxu1 %v5332_v15  ;;  %v5433_v14 = vld [vmem:[%s6759_s0 + $0xc] ss:$28 sps:$4 sm:$0xff]  }
  0x5d   :  { %2118 = vmatprep.subr.bf16.mxu0 %v5337_v16  ;;  %2570 = vmatprep.subr.bf16.mxu1 %v5340_v17  ;;  %v5425_v15 = vld [vmem:[#allocation2 + $0x4d8] ss:$20 sps:$4 sm:$0xff]   ;;  %v5428_v16 = vld [vmem:[#allocation2 + $0x4e0] ss:$20 sps:$4 sm:$0xff]  }
  0x5e   :  { %2051 = vmatprep.mubr.bf16.mxu0 %v5341_v18  ;;  %2503 = vmatprep.mubr.bf16.mxu1 %v5341_v18  ;;  %v5436_v17 = vld [vmem:[#allocation2 + $0x504] ss:$20 sps:$4 sm:$0xff]   ;;  %v5439_v18 = vld [vmem:[#allocation2 + $0x50c] ss:$20 sps:$4 sm:$0xff]  }
  0x60   :  { %2119 = vmatpush1.bf16.msra.mxu0 %v5335_v19  ;;  %2571 = vmatpush1.bf16.msra.mxu1 %v5338_v20  ;;  %v5431_v19 = vld [vmem:[%s6759_s0 + $0x8] ss:$28 sps:$4 sm:$0xff]   ;;  %v5434_v20 = vld [vmem:[#allocation2 + $0x500] ss:$20 sps:$4 sm:$0xff]  }
  0x61   :  { %2120 = vmatprep.subr.bf16.mxu0 %v5346_v21  ;;  %2572 = vmatprep.subr.bf16.mxu1 %v5349_v22  ;;  %v5437_v21 = vld [vmem:[#allocation2 + $0x508] ss:$20 sps:$4 sm:$0xff]   ;;  %v5442_v22 = vld [vmem:[#allocation2 + $0x52c] ss:$20 sps:$4 sm:$0xff]  }
  0x63   :  { %2052 = vmatmul.mubr.bf16.gmra.mrb[8].mxu0 %v5343_v23  ;;  %2504 = vmatmul.mubr.bf16.gmra.mrb[8].mxu1 %v5343_v23  ;;  %v5445_v23 = vld [vmem:[#allocation2 + $0x534] ss:$20 sps:$4 sm:$0xff]  }
  0x64   :  { %2121 = vmatpush1.bf16.msra.mxu0 %v5344_v24  ;;  %2573 = vmatpush1.bf16.msra.mxu1 %v5347_v25  ;;  %v5446_v24 = vld [vmem:[%s6759_s0 + $0x44] ss:$28 sps:$4 sm:$0xff]   ;;  %v5440_v25 = vld [vmem:[#allocation2 + $0x528] ss:$20 sps:$4 sm:$0xff]  }
  0x65   :  { %2122 = vmatprep.subr.bf16.mxu0 %v5352_v26  ;;  %2574 = vmatprep.subr.bf16.mxu1 %v5355_v27  ;;  %v5443_v26 = vld [vmem:[#allocation2 + $0x530] ss:$20 sps:$4 sm:$0xff]   ;;  %v5451_v27 = vld [vmem:[#allocation2 + $0x554] ss:$20 sps:$4 sm:$0xff]  }
  0x66   :  { %2061 = vmatprep.mubr.bf16.mxu0 %v5356_v28  ;;  %2513 = vmatprep.mubr.bf16.mxu1 %v5356_v28  ;;  %v5454_v28 = vld [vmem:[#allocation2 + $0x55c] ss:$20 sps:$4 sm:$0xff]  }
  0x68   :  { %2123 = vmatpush1.bf16.msra.mxu0 %v5350_v29  ;;  %2575 = vmatpush1.bf16.msra.mxu1 %v5353_v30  ;;  %v5448_v29 = vld [vmem:[%s6759_s0 + $0x40] ss:$28 sps:$4 sm:$0xff]   ;;  %v5449_v30 = vld [vmem:[#allocation2 + $0x550] ss:$20 sps:$4 sm:$0xff]  }
  0x69   :  { %2124 = vmatprep.subr.bf16.mxu0 %v5361_v31  ;;  %2576 = vmatprep.subr.bf16.mxu1 %v5364_v32  ;;  %v5452_v31 = vld [vmem:[#allocation2 + $0x558] ss:$20 sps:$4 sm:$0xff]   ;;  %v5457_v32 = vld [vmem:[#allocation2 + $0x57c] ss:$20 sps:$4 sm:$0xff]  }
  0x6b   :  { %2062 = vmatmul.mubr.bf16.gmra.mrb[12].mxu0 %v5358_v33  ;;  %2514 = vmatmul.mubr.bf16.gmra.mrb[12].mxu1 %v5358_v33  ;;  %v5460_v33 = vld [vmem:[#allocation2 + $0x584] ss:$20 sps:$4 sm:$0xff]  }
  0x6c   :  { %2125 = vmatpush1.bf16.msra.mxu0 %v5359_v34  ;;  %2577 = vmatpush1.bf16.msra.mxu1 %v5362_v35  ;;  %v5461_v34 = vld [vmem:[%s6759_s0 + $0x7c] ss:$28 sps:$4 sm:$0xff]  }
  0x6d   :  { %2126 = vmatprep.subr.bf16.mxu0 %v5367_v36  ;;  %2578 = vmatprep.subr.bf16.mxu1 %v5370_v37  ;;  %v5455_v35 = vld [vmem:[#allocation2 + $0x578] ss:$20 sps:$4 sm:$0xff]   ;;  %v5458_v36 = vld [vmem:[#allocation2 + $0x580] ss:$20 sps:$4 sm:$0xff]  }
  0x6e   :  { %2071 = vmatprep.mubr.bf16.mxu0 %v5371_v38  ;;  %2523 = vmatprep.mubr.bf16.mxu1 %v5371_v38  ;;  %v5466_v37 = vld [vmem:[#allocation2 + $0x5a4] ss:$20 sps:$4 sm:$0xff]   ;;  %v5469_v38 = vld [vmem:[#allocation2 + $0x5ac] ss:$20 sps:$4 sm:$0xff]  }
  0x70   :  { %2127 = vmatpush1.bf16.msra.mxu0 %v5365_v39  ;;  %2579 = vmatpush1.bf16.msra.mxu1 %v5368_v40  ;;  %v5463_v39 = vld [vmem:[%s6759_s0 + $0x78] ss:$28 sps:$4 sm:$0xff]  }
  0x71   :  { %2128 = vmatprep.subr.bf16.mxu0 %v5376_v41  ;;  %2580 = vmatprep.subr.bf16.mxu1 %v5379_v42  ;;  %v5464_v40 = vld [vmem:[#allocation2 + $0x5a0] ss:$20 sps:$4 sm:$0xff]   ;;  %v5467_v41 = vld [vmem:[#allocation2 + $0x5a8] ss:$20 sps:$4 sm:$0xff]  }
  0x72   :  { %v5472_v42 = vld [vmem:[#allocation2 + $0x5cc] ss:$20 sps:$4 sm:$0xff]  }
  0x73   :  { %2072 = vmatmul.mubr.bf16.gmra.mrb[16].mxu0 %v5373_v43  ;;  %2524 = vmatmul.mubr.bf16.gmra.mrb[16].mxu1 %v5373_v43  ;;  %v5475_v43 = vld [vmem:[#allocation2 + $0x5d4] ss:$20 sps:$4 sm:$0xff]  }
  0x74   :  { %2129 = vmatpush1.bf16.msra.mxu0 %v5374_v44  ;;  %2581 = vmatpush1.bf16.msra.mxu1 %v5377_v45  ;;  %v5476_v44 = vld [vmem:[%s6759_s0 + $0xb4] ss:$28 sps:$4 sm:$0xff]   ;;  %v5470_v45 = vld [vmem:[#allocation2 + $0x5c8] ss:$20 sps:$4 sm:$0xff]  }
  0x75   :  { %2130 = vmatprep.subr.bf16.mxu0 %v5382_v46  ;;  %2582 = vmatprep.subr.bf16.mxu1 %v5385_v47  ;;  %v5473_v46 = vld [vmem:[#allocation2 + $0x5d0] ss:$20 sps:$4 sm:$0xff]   ;;  %v5481_v47 = vld [vmem:[#allocation2 + $0x5f4] ss:$20 sps:$4 sm:$0xff]  }
  0x76   :  { %2081 = vmatprep.mubr.bf16.mxu0 %v5386_v48  ;;  %2533 = vmatprep.mubr.bf16.mxu1 %v5386_v48  ;;  %v5484_v48 = vld [vmem:[#allocation2 + $0x5fc] ss:$20 sps:$4 sm:$0xff]  }
  0x78   :  { %2131 = vmatpush1.bf16.msra.mxu0 %v5380_v49  ;;  %2583 = vmatpush1.bf16.msra.mxu1 %v5383_v50  ;;  %v5478_v49 = vld [vmem:[%s6759_s0 + $0xb0] ss:$28 sps:$4 sm:$0xff]  }
  0x79   :  { %2132 = vmatprep.subr.bf16.mxu0 %v5391_v51  ;;  %2584 = vmatprep.subr.bf16.mxu1 %v5394_v52  ;;  %v5479_v50 = vld [vmem:[#allocation2 + $0x5f0] ss:$20 sps:$4 sm:$0xff]   ;;  %v5482_v51 = vld [vmem:[#allocation2 + $0x5f8] ss:$20 sps:$4 sm:$0xff]  }
  0x7a   :  { %v5487_v52 = vld [vmem:[#allocation2 + $0x61c] ss:$20 sps:$4 sm:$0xff]  }
  0x7b   :  { %2082 = vmatmul.mubr.bf16.gmra.mrb[20].mxu0 %v5388_v53  ;;  %2534 = vmatmul.mubr.bf16.gmra.mrb[20].mxu1 %v5388_v53  ;;  %v5490_v53 = vld [vmem:[#allocation2 + $0x624] ss:$20 sps:$4 sm:$0xff]  }
  0x7c   :  { %2133 = vmatpush1.bf16.msra.mxu0 %v5389_v54  ;;  %2585 = vmatpush1.bf16.msra.mxu1 %v5392_v55  ;;  %v5491_v54 = vld [vmem:[%s6759_s0 + $0xec] ss:$28 sps:$4 sm:$0xff]  }
  0x7d   :  { %2134 = vmatprep.subr.bf16.mxu0 %v5397_v56  ;;  %2586 = vmatprep.subr.bf16.mxu1 %v5400_v57  ;;  %v5485_v55 = vld [vmem:[#allocation2 + $0x618] ss:$20 sps:$4 sm:$0xff]   ;;  %v5488_v56 = vld [vmem:[#allocation2 + $0x620] ss:$20 sps:$4 sm:$0xff]  }
  0x7e   :  { %2091 = vmatprep.mubr.bf16.mxu0 %v5401_v58  ;;  %2543 = vmatprep.mubr.bf16.mxu1 %v5401_v58  ;;  %v5496_v57 = vld [vmem:[#allocation2 + $0x644] ss:$20 sps:$4 sm:$0xff]   ;;  %v5499_v58 = vld [vmem:[#allocation2 + $0x64c] ss:$20 sps:$4 sm:$0xff]  }
  0x80   :  { %2135 = vmatpush1.bf16.msra.mxu0 %v5395_v59  ;;  %2587 = vmatpush1.bf16.msra.mxu1 %v5398_v60  ;;  %v5915_v59 = vld [vmem:[%s6759_s0 + $0xe8] ss:$28 sps:$4 sm:$0xff]   ;;  %v5494_v60 = vld [vmem:[#allocation2 + $0x640] ss:$20 sps:$4 sm:$0xff]  }
  0x81   :  { %2136 = vmatprep.subr.bf16.mxu0 %v5406_v61  ;;  %2588 = vmatprep.subr.bf16.mxu1 %v5409_v62  ;;  %v5497_v61 = vld [vmem:[#allocation2 + $0x648] ss:$20 sps:$4 sm:$0xff]   ;;  %v5502_v62 = vld [vmem:[#allocation2 + $0x66c] ss:$20 sps:$4 sm:$0xff]  }
  0x83   :  { %2092 = vmatmul.mubr.bf16.gmra.mrb[24].mxu0 %v5403_v63  ;;  %2544 = vmatmul.mubr.bf16.gmra.mrb[24].mxu1 %v5403_v63  ;;  %v5505_v63 = vld [vmem:[#allocation2 + $0x674] ss:$20 sps:$4 sm:$0xff]  }
  0x84   :  { %2137 = vmatpush1.bf16.msra.mxu0 %v5404_v0  ;;  %2589 = vmatpush1.bf16.msra.mxu1 %v5407_v1  ;;  %v5500_v0 = vld [vmem:[#allocation2 + $0x668] ss:$20 sps:$4 sm:$0xff]   ;;  %v5920_v1 = vld [vmem:[%s6759_s0 + $0x124] ss:$28 sps:$4 sm:$0xff]  }
  0x85   :  { %2138 = vmatprep.subr.bf16.mxu0 %v5412_v2  ;;  %2590 = vmatprep.subr.bf16.mxu1 %v5415_v3  ;;  %v5503_v2 = vld [vmem:[#allocation2 + $0x670] ss:$20 sps:$4 sm:$0xff]   ;;  %v5511_v3 = vld [vmem:[#allocation2 + $0x694] ss:$20 sps:$4 sm:$0xff]  }
  0x86   :  { %2101 = vmatprep.mubr.bf16.mxu0 %v5416_v4  ;;  %2553 = vmatprep.mubr.bf16.mxu1 %v5416_v4  ;;  %v5927_v4 = vld [vmem:[%s6759_s0 + $0x120] ss:$28 sps:$4 sm:$0xff]  }
  0x88   :  { %2139 = vmatpush1.bf16.msra.mxu0 %v5410_v5  ;;  %2591 = vmatpush1.bf16.msra.mxu1 %v5413_v6  ;;  %v5514_v5 = vld [vmem:[#allocation2 + $0x69c] ss:$20 sps:$4 sm:$0xff]  }
  0x89   :  { %2140 = vmatprep.subr.bf16.mxu0 %v5421_v7  ;;  %2592 = vmatprep.subr.bf16.mxu1 %v5424_v8  ;;  %v5509_v6 = vld [vmem:[#allocation2 + $0x690] ss:$20 sps:$4 sm:$0xff]   ;;  %v5512_v7 = vld [vmem:[#allocation2 + $0x698] ss:$20 sps:$4 sm:$0xff]  }
  0x8a   :  { %v5517_v8 = vld [vmem:[#allocation2 + $0x6bc] ss:$20 sps:$4 sm:$0xff]  }
  0x8b   :  { %2102 = vmatmul.mubr.bf16.gmra.mrb[28].mxu0 %v5418_v9  ;;  %2554 = vmatmul.mubr.bf16.gmra.mrb[28].mxu1 %v5418_v9  ;;  %v5520_v9 = vld [vmem:[#allocation2 + $0x6c4] ss:$20 sps:$4 sm:$0xff]  }
  0x8c   :  { %2141 = vmatpush1.bf16.msra.mxu0 %v5419_v10  ;;  %2593 = vmatpush1.bf16.msra.mxu1 %v5422_v11  ;;  %v5515_v10 = vld [vmem:[#allocation2 + $0x6b8] ss:$20 sps:$4 sm:$0xff]  }
  0x8d   :  { %2142 = vmatprep.subr.bf16.mxu0 %v5427_v12  ;;  %2594 = vmatprep.subr.bf16.mxu1 %v5430_v13  ;;  %v5934_v11 = vld [vmem:[%s6759_s0 + $0x15c] ss:$28 sps:$4 sm:$0xff]   ;;  %v5518_v12 = vld [vmem:[#allocation2 + $0x6c0] ss:$20 sps:$4 sm:$0xff]  }
  0x8e   :  { %2144 = vmatprep.mubr.bf16.mxu0 %v5433_v14  ;;  %2596 = vmatprep.mubr.bf16.mxu1 %v5433_v14  ;;  %v5526_v13 = vld [vmem:[#allocation2 + $0x6e4] ss:$20 sps:$4 sm:$0xff]  }
  0x8f   :  { %v5941_v14 = vld [vmem:[%s6759_s0 + $0x158] ss:$28 sps:$4 sm:$0xff]  }
  0x90   :  { %2143 = vmatpush1.bf16.msra.mxu0 %v5425_v15  ;;  %2595 = vmatpush1.bf16.msra.mxu1 %v5428_v16  ;;  %v5529_v15 = vld [vmem:[#allocation2 + $0x6ec] ss:$20 sps:$4 sm:$0xff]  }
  0x91   :  { %2225 = vmatprep.subr.bf16.mxu0 %v5436_v17  ;;  %2677 = vmatprep.subr.bf16.mxu1 %v5439_v18  ;;  %v5524_v16 = vld [vmem:[#allocation2 + $0x6e0] ss:$20 sps:$4 sm:$0xff]   ;;  %v5527_v17 = vld [vmem:[#allocation2 + $0x6e8] ss:$20 sps:$4 sm:$0xff]  }
  0x92   :  { %v5532_v18 = vld [vmem:[#allocation2 + $0x70c] ss:$20 sps:$4 sm:$0xff]  }
  0x93   :  { %2145 = vmatmul.mubr.bf16.vlgmr.msra.gmra.mrb[0].mxu0 %v5431_v19  ;;  %2597 = vmatmul.mubr.bf16.vlgmr.msra.gmra.mrb[0].mxu1 %v5431_v19  ;;  %v5535_v19 = vld [vmem:[#allocation2 + $0x714] ss:$20 sps:$4 sm:$0xff]  }
  0x94   :  { %2226 = vmatpush1.bf16.msra.mxu0 %v5434_v20  ;;  %2678 = vmatpush1.bf16.msra.mxu1 %v5437_v21  ;;  %v5530_v20 = vld [vmem:[#allocation2 + $0x708] ss:$20 sps:$4 sm:$0xff]   ;;  %v5948_v21 = vld [vmem:[%s6759_s0 + $0x194] ss:$28 sps:$4 sm:$0xff]  }
  0x95   :  { %2227 = vmatprep.subr.bf16.mxu0 %v5442_v22  ;;  %2679 = vmatprep.subr.bf16.mxu1 %v5445_v23  ;;  %v5533_v22 = vld [vmem:[#allocation2 + $0x710] ss:$20 sps:$4 sm:$0xff]   ;;  %v5541_v23 = vld [vmem:[#allocation2 + $0x734] ss:$20 sps:$4 sm:$0xff]  }
  0x96   :  { %2154 = vmatprep.mubr.bf16.mxu0 %v5446_v24  ;;  %2606 = vmatprep.mubr.bf16.mxu1 %v5446_v24  ;;  %v5955_v24 = vld [vmem:[%s6759_s0 + $0x190] ss:$28 sps:$4 sm:$0xff]  }
  0x98   :  { %2228 = vmatpush1.bf16.msra.mxu0 %v5440_v25  ;;  %2680 = vmatpush1.bf16.msra.mxu1 %v5443_v26  ;;  %v5544_v25 = vld [vmem:[#allocation2 + $0x73c] ss:$20 sps:$4 sm:$0xff]  }
  0x99   :  { %2229 = vmatprep.subr.bf16.mxu0 %v5451_v27  ;;  %2681 = vmatprep.subr.bf16.mxu1 %v5454_v28  ;;  %v5539_v26 = vld [vmem:[#allocation2 + $0x730] ss:$20 sps:$4 sm:$0xff]   ;;  %v5542_v27 = vld [vmem:[#allocation2 + $0x738] ss:$20 sps:$4 sm:$0xff]  }
  0x9a   :  { %v5547_v28 = vld [vmem:[#allocation2 + $0x75c] ss:$20 sps:$4 sm:$0xff]  }
  0x9b   :  { %2155 = vmatmul.mubr.bf16.gmra.mrb[4].mxu0 %v5448_v29  ;;  %2607 = vmatmul.mubr.bf16.gmra.mrb[4].mxu1 %v5448_v29  ;;  %v5550_v29 = vld [vmem:[#allocation2 + $0x764] ss:$20 sps:$4 sm:$0xff]  }
  0x9c   :  { %2230 = vmatpush1.bf16.msra.mxu0 %v5449_v30  ;;  %2682 = vmatpush1.bf16.msra.mxu1 %v5452_v31  ;;  %v5545_v30 = vld [vmem:[#allocation2 + $0x758] ss:$20 sps:$4 sm:$0xff]   ;;  %v5962_v31 = vld [vmem:[%s6759_s0 + $0x14] ss:$28 sps:$4 sm:$0xff]  }
  0x9d   :  { %2231 = vmatprep.subr.bf16.mxu0 %v5457_v32  ;;  %2683 = vmatprep.subr.bf16.mxu1 %v5460_v33  ;;  %v5548_v32 = vld [vmem:[#allocation2 + $0x760] ss:$20 sps:$4 sm:$0xff]   ;;  %v5556_v33 = vld [vmem:[#allocation2 + $0x784] ss:$20 sps:$4 sm:$0xff]  }
  0x9e   :  { %2164 = vmatprep.mubr.bf16.mxu0 %v5461_v34  ;;  %2616 = vmatprep.mubr.bf16.mxu1 %v5461_v34  ;;  %v5969_v34 = vld [vmem:[%s6759_s0 + $0x10] ss:$28 sps:$4 sm:$0xff]  }
  0xa0   :  { %2232 = vmatpush1.bf16.msra.mxu0 %v5455_v35  ;;  %2684 = vmatpush1.bf16.msra.mxu1 %v5458_v36  ;;  %v5571_v35 = vld [vmem:[#allocation2 + $0x78c] ss:$20 sps:$4 sm:$0xff]  }
  0xa1   :  { %2233 = vmatprep.subr.bf16.mxu0 %v5466_v37  ;;  %2685 = vmatprep.subr.bf16.mxu1 %v5469_v38  ;;  %v5554_v36 = vld [vmem:[#allocation2 + $0x780] ss:$20 sps:$4 sm:$0xff]   ;;  %v5976_v37 = vld [vmem:[%s6759_s0 + $0x4c] ss:$28 sps:$4 sm:$0xff]  }
  0xa2   :  { %v5569_v38 = vld [vmem:[#allocation2 + $0x788] ss:$20 sps:$4 sm:$0xff]  }
  0xa3   :  { %2165 = vmatmul.mubr.bf16.gmra.mrb[8].mxu0 %v5463_v39  ;;  %2617 = vmatmul.mubr.bf16.gmra.mrb[8].mxu1 %v5463_v39  ;;  %v5582_v39 = vld [vmem:[#allocation2 + $0x150] ss:$20 sps:$4 sm:$0xff]  }
  0xa4   :  { %2234 = vmatpush1.bf16.msra.mxu0 %v5464_v40  ;;  %2686 = vmatpush1.bf16.msra.mxu1 %v5467_v41  ;;  %v5596_v40 = vld [vmem:[#allocation2 + $0x3d0] ss:$20 sps:$4 sm:$0xff]  }
  0xa5   :  { %2235 = vmatprep.subr.bf16.mxu0 %v5472_v42  ;;  %2687 = vmatprep.subr.bf16.mxu1 %v5475_v43  ;;  %v5985_v41 = vld [vmem:[%s6759_s0 + $0x48] ss:$28 sps:$4 sm:$0xff]   ;;  %v5999_v43 = vld [vmem:[%s6759_s0 + $0x80] ss:$28 sps:$4 sm:$0xff]  }
  0xa6   :  { %2174 = vmatprep.mubr.bf16.mxu0 %v5476_v44  ;;  %2626 = vmatprep.mubr.bf16.mxu1 %v5476_v44  ;;  %v5990_v42 = vld [vmem:[%s6759_s0 + $0x84] ss:$28 sps:$4 sm:$0xff]   ;;  %v6004_v44 = vld [vmem:[%s6759_s0 + $0xbc] ss:$28 sps:$4 sm:$0xff]  }
  0xa8   :  { %2236 = vmatpush1.bf16.msra.mxu0 %v5470_v45  ;;  %2688 = vmatpush1.bf16.msra.mxu1 %v5473_v46  ;;  %v6013_v45 = vld [vmem:[%s6759_s0 + $0xb8] ss:$28 sps:$4 sm:$0xff]  }
  0xa9   :  { %2237 = vmatprep.subr.bf16.mxu0 %v5481_v47  ;;  %2689 = vmatprep.subr.bf16.mxu1 %v5484_v48  ;;  %v6018_v46 = vld [vmem:[%s6759_s0 + $0xf4] ss:$28 sps:$4 sm:$0xff]   ;;  %v6032_v48 = vld [vmem:[%s6759_s0 + $0x12c] ss:$28 sps:$4 sm:$0xff]  }
  0xaa   :  { %v6027_v47 = vld [vmem:[%s6759_s0 + $0xf0] ss:$28 sps:$4 sm:$0xff]  }
  0xab   :  { %2175 = vmatmul.mubr.bf16.gmra.mrb[12].mxu0 %v5478_v49  ;;  %2627 = vmatmul.mubr.bf16.gmra.mrb[12].mxu1 %v5478_v49  ;;  %v6041_v49 = vld [vmem:[%s6759_s0 + $0x128] ss:$28 sps:$4 sm:$0xff]  }
  0xac   :  { %2238 = vmatpush1.bf16.msra.mxu0 %v5479_v50  ;;  %2690 = vmatpush1.bf16.msra.mxu1 %v5482_v51  ;;  %v6046_v50 = vld [vmem:[%s6759_s0 + $0x164] ss:$28 sps:$4 sm:$0xff]  }
  0xad   :  { %2239 = vmatprep.subr.bf16.mxu0 %v5487_v52  ;;  %2691 = vmatprep.subr.bf16.mxu1 %v5490_v53  ;;  %v6055_v51 = vld [vmem:[%s6759_s0 + $0x160] ss:$28 sps:$4 sm:$0xff]   ;;  %v6069_v53 = vld [vmem:[%s6759_s0 + $0x198] ss:$28 sps:$4 sm:$0xff]  }
  0xae   :  { %2184 = vmatprep.mubr.bf16.mxu0 %v5491_v54  ;;  %2636 = vmatprep.mubr.bf16.mxu1 %v5491_v54  ;;  %v6060_v52 = vld [vmem:[%s6759_s0 + $0x19c] ss:$28 sps:$4 sm:$0xff]   ;;  %v5794_v54 = vmov 0  }
  0xb0   :  { %2240 = vmatpush1.bf16.msra.mxu0 %v5485_v55  ;;  %2692 = vmatpush1.bf16.msra.mxu1 %v5488_v56  ;;  %v6078_v55 = vld [vmem:[%s6759_s0 + $0x18] ss:$28 sps:$4 sm:$0xff]   ;;  %v5583_v56 = vld [vmem:[#allocation2 + $0x10] ss:$20 sps:$4 sm:$0xff]  }
  0xb1   :  { %2241 = vmatprep.subr.bf16.mxu0 %v5496_v57  ;;  %2693 = vmatprep.subr.bf16.mxu1 %v5499_v58  ;;  %v5585_v57 = vld [vmem:[#allocation2 + $0x178] ss:$20 sps:$4 sm:$0xff]   ;;  %v5597_v58 = vld [vmem:[#allocation2 + $0x290] ss:$20 sps:$4 sm:$0xff]  }
  0xb3   :  { %2185 = vmatmul.mubr.bf16.gmra.mrb[16].mxu0 %v5915_v59  ;;  %2637 = vmatmul.mubr.bf16.gmra.mrb[16].mxu1 %v5915_v59 }
  0xb4   :  { %2242 = vmatpush1.bf16.msra.mxu0 %v5494_v60  ;;  %2694 = vmatpush1.bf16.msra.mxu1 %v5497_v61  ;;  %v5598_v60 = vld [vmem:[#allocation2 + $0x3f8] ss:$20 sps:$4 sm:$0xff]  }
  0xb5   :  { %2243 = vmatprep.subr.bf16.mxu0 %v5502_v62  ;;  %2695 = vmatprep.subr.bf16.mxu1 %v5505_v63  ;;  %v5586_v61 = vld [vmem:[#allocation2 + $0x38] ss:$20 sps:$4 sm:$0xff]   ;;  %v5588_v62 = vld [vmem:[#allocation2 + $0x1a0] ss:$20 sps:$4 sm:$0xff]  }
  0xb6   :  { %2194 = vmatprep.mubr.bf16.mxu0 %v5920_v1  ;;  %2646 = vmatprep.mubr.bf16.mxu1 %v5920_v1  ;;  %v5599_v63 = vld [vmem:[#allocation2 + $0x2b8] ss:$20 sps:$4 sm:$0xff]  }
  0xb8   :  { %2244 = vmatpush1.bf16.msra.mxu0 %v5500_v0  ;;  %2696 = vmatpush1.bf16.msra.mxu1 %v5503_v2  ;;  %v6089_v0 = vld [vmem:[%s6759_s0 + $0x50] ss:$28 sps:$4 sm:$0xff]   ;;  %v5589_v2 = vld [vmem:[#allocation2 + $0x60] ss:$20 sps:$4 sm:$0xff]  }
  0xb9   :  { %2245 = vmatprep.subr.bf16.mxu0 %v5511_v3  ;;  %2697 = vmatprep.subr.bf16.mxu1 %v5514_v5  ;;  %v5603_v3 = vld [vmem:[#allocation2 + $0x420] ss:$20 sps:$4 sm:$0xff]   ;;  %v5591_v5 = vld [vmem:[#allocation2 + $0x1c8] ss:$20 sps:$4 sm:$0xff]  }
  0xbb   :  { %2195 = vmatmul.mubr.bf16.gmra.mrb[20].mxu0 %v5927_v4  ;;  %2647 = vmatmul.mubr.bf16.gmra.mrb[20].mxu1 %v5927_v4 }
  0xbc   :  { %2246 = vmatpush1.bf16.msra.mxu0 %v5509_v6  ;;  %2698 = vmatpush1.bf16.msra.mxu1 %v5512_v7  ;;  %v5604_v6 = vld [vmem:[#allocation2 + $0x2e0] ss:$20 sps:$4 sm:$0xff]   ;;  %v5605_v7 = vld [vmem:[#allocation2 + $0x448] ss:$20 sps:$4 sm:$0xff]  }
  0xbd   :  { %2247 = vmatprep.subr.bf16.mxu0 %v5517_v8  ;;  %2699 = vmatprep.subr.bf16.mxu1 %v5520_v9  ;;  %v5592_v8 = vld [vmem:[#allocation2 + $0x88] ss:$20 sps:$4 sm:$0xff]   ;;  %v5594_v9 = vld [vmem:[#allocation2 + $0x1f0] ss:$20 sps:$4 sm:$0xff]  }
  0xbe   :  { %2204 = vmatprep.mubr.bf16.mxu0 %v5934_v11  ;;  %2656 = vmatprep.mubr.bf16.mxu1 %v5934_v11 }
  0xc0   :  { %2248 = vmatpush1.bf16.msra.mxu0 %v5515_v10  ;;  %2700 = vmatpush1.bf16.msra.mxu1 %v5518_v12  ;;  %v5606_v10 = vld [vmem:[#allocation2 + $0x308] ss:$20 sps:$4 sm:$0xff]  }
  0xc1   :  { %2249 = vmatprep.subr.bf16.mxu0 %v5526_v13  ;;  %2701 = vmatprep.subr.bf16.mxu1 %v5529_v15  ;;  %v6100_v12 = vld [vmem:[%s6759_s0 + $0x88] ss:$28 sps:$4 sm:$0xff]  }
  0xc2   :  { %v5595_v13 = vld [vmem:[#allocation2 + $0xb0] ss:$20 sps:$4 sm:$0xff]  }
  0xc3   :  { %2205 = vmatmul.mubr.bf16.gmra.mrb[24].mxu0 %v5941_v14  ;;  %2657 = vmatmul.mubr.bf16.gmra.mrb[24].mxu1 %v5941_v14  ;;  %v5610_v15 = vld [vmem:[#allocation2 + $0x470] ss:$20 sps:$4 sm:$0xff]  }
  0xc4   :  { %2250 = vmatpush1.bf16.msra.mxu0 %v5524_v16  ;;  %2702 = vmatpush1.bf16.msra.mxu1 %v5527_v17  ;;  %v5601_v16 = vld [vmem:[#allocation2 + $0x218] ss:$20 sps:$4 sm:$0xff]   ;;  %v5611_v17 = vld [vmem:[#allocation2 + $0x330] ss:$20 sps:$4 sm:$0xff]  }
  0xc5   :  { %2251 = vmatprep.subr.bf16.mxu0 %v5532_v18  ;;  %2703 = vmatprep.subr.bf16.mxu1 %v5535_v19  ;;  %v5612_v18 = vld [vmem:[#allocation2 + $0x498] ss:$20 sps:$4 sm:$0xff]  }
  0xc6   :  { %2214 = vmatprep.mubr.bf16.mxu0 %v5948_v21  ;;  %2666 = vmatprep.mubr.bf16.mxu1 %v5948_v21  ;;  %v5602_v19 = vld [vmem:[#allocation2 + $0xd8] ss:$20 sps:$4 sm:$0xff]  }
  0xc8   :  { %2252 = vmatpush1.bf16.msra.mxu0 %v5530_v20  ;;  %2704 = vmatpush1.bf16.msra.mxu1 %v5533_v22  ;;  %v5608_v20 = vld [vmem:[#allocation2 + $0x240] ss:$20 sps:$4 sm:$0xff]   ;;  %v5613_v22 = vld [vmem:[#allocation2 + $0x358] ss:$20 sps:$4 sm:$0xff]  }
  0xc9   :  { %2253 = vmatprep.subr.bf16.mxu0 %v5541_v23  ;;  %2705 = vmatprep.subr.bf16.mxu1 %v5544_v25  ;;  %v6111_v23 = vld [vmem:[%s6759_s0 + $0xc0] ss:$28 sps:$4 sm:$0xff]  }
  0xca   :  { %v5609_v25 = vld [vmem:[#allocation2 + $0x100] ss:$20 sps:$4 sm:$0xff]  }
  0xcb   :  { %2215 = vmatmul.mubr.bf16.gmra.mrb[28].mxu0 %v5955_v24  ;;  %2667 = vmatmul.mubr.bf16.gmra.mrb[28].mxu1 %v5955_v24 }
  0xcc   :  { %2254 = vmatpush1.bf16.msra.mxu0 %v5539_v26  ;;  %2706 = vmatpush1.bf16.msra.mxu1 %v5542_v27  ;;  %v5617_v26 = vld [vmem:[#allocation2 + $0x4c0] ss:$20 sps:$4 sm:$0xff]   ;;  %v5615_v27 = vld [vmem:[#allocation2 + $0x268] ss:$20 sps:$4 sm:$0xff]  }
  0xcd   :  { %2255 = vmatprep.subr.bf16.mxu0 %v5547_v28  ;;  %2707 = vmatprep.subr.bf16.mxu1 %v5550_v29  ;;  %v5618_v28 = vld [vmem:[#allocation2 + $0x380] ss:$20 sps:$4 sm:$0xff]   ;;  %v5619_v29 = vld [vmem:[#allocation2 + $0x4e8] ss:$20 sps:$4 sm:$0xff]  }
  0xce   :  { %2257 = vmatprep.mubr.bf16.mxu0 %v5962_v31  ;;  %2709 = vmatprep.mubr.bf16.mxu1 %v5962_v31 }
  0xd0   :  { %2256 = vmatpush1.bf16.msra.mxu0 %v5545_v30  ;;  %2708 = vmatpush1.bf16.msra.mxu1 %v5548_v32  ;;  %v5616_v30 = vld [vmem:[#allocation2 + $0x128] ss:$20 sps:$4 sm:$0xff]  }
  0xd1   :  { %2338 = vmatprep.subr.bf16.mxu0 %v5556_v33  ;;  %2790 = vmatprep.subr.bf16.mxu1 %v5571_v35  ;;  %v5620_v32 = vld [vmem:[#allocation2 + $0x3a8] ss:$20 sps:$4 sm:$0xff]   ;;  %v5621_v33 = vld [vmem:[#allocation2 + $0x650] ss:$20 sps:$4 sm:$0xff]   ;;  %v6122_v35 = vld [vmem:[%s6759_s0 + $0xf8] ss:$28 sps:$4 sm:$0xff]  }
  0xd3   :  { %2258 = vmatmul.mubr.bf16.vlgmr.msra.gmra.mrb[0].mxu0 %v5969_v34  ;;  %2710 = vmatmul.mubr.bf16.vlgmr.msra.gmra.mrb[0].mxu1 %v5969_v34 }
  0xd4   :  { %2339 = vmatpush1.bf16.msra.mxu0 %v5554_v36  ;;  %2267 = vmatprep.mubr.bf16.mxu0 %v5976_v37  ;;  %v5631_v36 = vld [vmem:[#allocation2 + $0x790] ss:$20 sps:$4 sm:$0xff]  }
  0xd5   :  { %2719 = vmatprep.mubr.bf16.mxu1 %v5976_v37  ;;  %2791 = vmatpush1.bf16.msra.mxu1 %v5569_v38  ;;  %v6133_v38 = vld [vmem:[%s6759_s0 + $0x130] ss:$28 sps:$4 sm:$0xff]  }
  0xd6   :  { %4560 = vmatprep.subr.bf16.mxu0 %v5582_v39  ;;  %4624 = vmatprep.subr.bf16.mxu1 %v5596_v40  ;;  %v6144_v39 = vld [vmem:[%s6759_s0 + $0x168] ss:$28 sps:$4 sm:$0xff]   ;;  %v6155_v40 = vld [vmem:[%s6759_s0 + $0x1a0] ss:$28 sps:$4 sm:$0xff]  }
  0xdb   :  { %2268 = vmatmul.mubr.bf16.gmra.mrb[4].mxu0 %v5985_v41  ;;  %2720 = vmatmul.mubr.bf16.gmra.mrb[4].mxu1 %v5985_v41 }
  0xdc   :  { %2277 = vmatprep.mubr.bf16.mxu0 %v5990_v42  ;;  %2729 = vmatprep.mubr.bf16.mxu1 %v5990_v42 }
  0xe3   :  { %2278 = vmatmul.mubr.bf16.gmra.mrb[8].mxu0 %v5999_v43  ;;  %2730 = vmatmul.mubr.bf16.gmra.mrb[8].mxu1 %v5999_v43 }
  0xe4   :  { %2287 = vmatprep.mubr.bf16.mxu0 %v6004_v44  ;;  %2739 = vmatprep.mubr.bf16.mxu1 %v6004_v44 }
  0xeb   :  { %2288 = vmatmul.mubr.bf16.gmra.mrb[12].mxu0 %v6013_v45  ;;  %2740 = vmatmul.mubr.bf16.gmra.mrb[12].mxu1 %v6013_v45 }
  0xec   :  { %2297 = vmatprep.mubr.bf16.mxu0 %v6018_v46  ;;  %2749 = vmatprep.mubr.bf16.mxu1 %v6018_v46 }
  0xf3   :  { %2298 = vmatmul.mubr.bf16.gmra.mrb[16].mxu0 %v6027_v47  ;;  %2750 = vmatmul.mubr.bf16.gmra.mrb[16].mxu1 %v6027_v47 }
  0xf4   :  { %2307 = vmatprep.mubr.bf16.mxu0 %v6032_v48  ;;  %2759 = vmatprep.mubr.bf16.mxu1 %v6032_v48 }
  0xfb   :  { %2308 = vmatmul.mubr.bf16.gmra.mrb[20].mxu0 %v6041_v49  ;;  %2760 = vmatmul.mubr.bf16.gmra.mrb[20].mxu1 %v6041_v49 }
  0xfc   :  { %2317 = vmatprep.mubr.bf16.mxu0 %v6046_v50  ;;  %2769 = vmatprep.mubr.bf16.mxu1 %v6046_v50 }
 0x103   :  { %2318 = vmatmul.mubr.bf16.gmra.mrb[24].mxu0 %v6055_v51  ;;  %2770 = vmatmul.mubr.bf16.gmra.mrb[24].mxu1 %v6055_v51 }
 0x104   :  { %2327 = vmatprep.mubr.bf16.mxu0 %v6060_v52  ;;  %2779 = vmatprep.mubr.bf16.mxu1 %v6060_v52 }
 0x10b   :  { %2328 = vmatmul.mubr.bf16.gmra.mrb[28].mxu0 %v6069_v53  ;;  %2780 = vmatmul.mubr.bf16.gmra.mrb[28].mxu1 %v6069_v53 }
 0x10c   :  { %2370 = vmatprep.mubr.bf16.mxu0 %v5794_v54  ;;  %2822 = vmatprep.mubr.bf16.mxu1 %v5794_v54 }
 0x113   :  { %4495 = vmatmul.mubr.msk.bf16.vlgmr.msra.gmra.mrb[0].mxu0 %vm1974_vm0, %v6078_v55  ;;  %4503 = vmatmul.mubr.msk.bf16.vlgmr.msra.gmra.mrb[0].mxu1 %vm1974_vm0, %v6078_v55 }
 0x114   :  { %4561 = vmatpush3.bf16.msra.mxu0 %v5583_v56  ;;  %2380 = vmatprep.mubr.bf16.mxu0 %v5794_v54  ;;  %v5742_v56 = vld [vmem:[%s6759_s0 + $0x4] ss:$28 sps:$4 sm:$0xff]  }
 0x115   :  { %2832 = vmatprep.mubr.bf16.mxu1 %v5794_v54  ;;  %4562 = vmatprep.subr.bf16.mxu0 %v5585_v57  ;;  %v5622_v57 = vld [vmem:[#allocation2 + $0x510] ss:$20 sps:$4 sm:$0xff]  }
 0x116   :  { %4625 = vmatpush3.bf16.msra.mxu1 %v5597_v58  ;;  %v5623_v58 = vld [vmem:[#allocation2 + $0x678] ss:$20 sps:$4 sm:$0xff]  }
 0x117   :  { %4626 = vmatprep.subr.bf16.mxu1 %v5598_v60  ;;  %v5744_v60 = vld [vmem:[%s6759_s0] ss:$28 sps:$4 sm:$0xff]  }
 0x118   :  { %4563 = vmatpush3.bf16.msra.mxu0 %v5586_v61  ;;  %v5745_v61 = vld [vmem:[%s6759_s0 + $0x8] ss:$28 sps:$4 sm:$0xff]  }
 0x119   :  { %4564 = vmatprep.subr.bf16.mxu0 %v5588_v62  ;;  %v5638_v62 = vld [vmem:[%s6762_s3 + $0x40] sm:$0xff]  }
 0x11a   :  { %4627 = vmatpush3.bf16.msra.mxu1 %v5599_v63  ;;  %v5746_v63 = vld [vmem:[%s6759_s0 + $0x3c] ss:$28 sps:$4 sm:$0xff]  }
 0x11b   :  { %4496 = vmatmul.mubr.msk.bf16.gmra.mrb[4].mxu0 %vm1974_vm0, %v6089_v0  ;;  %4504 = vmatmul.mubr.msk.bf16.gmra.mrb[4].mxu1 %vm1974_vm0, %v6089_v0 }
 0x11c   :  { %2390 = vmatprep.mubr.bf16.mxu0 %v5794_v54  ;;  %2842 = vmatprep.mubr.bf16.mxu1 %v5794_v54 }
 0x11d   :  { %4565 = vmatpush3.bf16.msra.mxu0 %v5589_v2  ;;  %4628 = vmatprep.subr.bf16.mxu1 %v5603_v3  ;;  %v5624_v2 = vld [vmem:[#allocation2 + $0x538] ss:$20 sps:$4 sm:$0xff]   ;;  %v5747_v3 = vld [vmem:[%s6759_s0 + $0x44] ss:$28 sps:$4 sm:$0xff]  }
 0x11e   :  { %4566 = vmatprep.subr.bf16.mxu0 %v5591_v5  ;;  %4629 = vmatpush3.bf16.msra.mxu1 %v5604_v6  ;;  %v5625_v5 = vld [vmem:[#allocation2 + $0x6a0] ss:$20 sps:$4 sm:$0xff]  }
 0x11f   :  { %4630 = vmatprep.subr.bf16.mxu1 %v5605_v7  ;;  %v5626_v6 = vld [vmem:[#allocation2 + $0x560] ss:$20 sps:$4 sm:$0xff]   ;;  %v5627_v7 = vld [vmem:[#allocation2 + $0x6c8] ss:$20 sps:$4 sm:$0xff]  }
 0x121   :  { %4567 = vmatpush3.bf16.msra.mxu0 %v5592_v8  ;;  %v5748_v8 = vld [vmem:[%s6759_s0 + $0x38] ss:$28 sps:$4 sm:$0xff]  }
 0x122   :  { %4568 = vmatprep.subr.bf16.mxu0 %v5594_v9  ;;  %4631 = vmatpush3.bf16.msra.mxu1 %v5606_v10  ;;  %v5749_v9 = vld [vmem:[%s6759_s0 + $0x40] ss:$28 sps:$4 sm:$0xff]   ;;  %v5750_v10 = vld [vmem:[%s6759_s0 + $0x74] ss:$28 sps:$4 sm:$0xff]  }
 0x123   :  { %4497 = vmatmul.mubr.msk.bf16.gmra.mrb[8].mxu0 %vm1974_vm0, %v6100_v12  ;;  %4505 = vmatmul.mubr.msk.bf16.gmra.mrb[8].mxu1 %vm1974_vm0, %v6100_v12 }
 0x124   :  { %2400 = vmatprep.mubr.bf16.mxu0 %v5794_v54  ;;  %2852 = vmatprep.mubr.bf16.mxu1 %v5794_v54 }
 0x125   :  { %4569 = vmatpush3.bf16.msra.mxu0 %v5595_v13  ;;  %4632 = vmatprep.subr.bf16.mxu1 %v5610_v15  ;;  %v5751_v13 = vld [vmem:[%s6759_s0 + $0x7c] ss:$28 sps:$4 sm:$0xff]  }
 0x126   :  { %4570 = vmatprep.subr.bf16.mxu0 %v5601_v16  ;;  %4633 = vmatpush3.bf16.msra.mxu1 %v5611_v17  ;;  %v5628_v15 = vld [vmem:[#allocation2 + $0x588] ss:$20 sps:$4 sm:$0xff]   ;;  %v5629_v16 = vld [vmem:[#allocation2 + $0x6f0] ss:$20 sps:$4 sm:$0xff]  }
 0x127   :  { %4634 = vmatprep.subr.bf16.mxu1 %v5612_v18  ;;  %v5630_v17 = vld [vmem:[#allocation2 + $0x5b0] ss:$20 sps:$4 sm:$0xff]   ;;  %v5632_v18 = vld [vmem:[#allocation2 + $0x718] ss:$20 sps:$4 sm:$0xff]  }
 0x129   :  { %4571 = vmatpush3.bf16.msra.mxu0 %v5602_v19  ;;  %v5752_v19 = vld [vmem:[%s6759_s0 + $0x70] ss:$28 sps:$4 sm:$0xff]  }
 0x12a   :  { %4572 = vmatprep.subr.bf16.mxu0 %v5608_v20  ;;  %4635 = vmatpush3.bf16.msra.mxu1 %v5613_v22  ;;  %v5753_v20 = vld [vmem:[%s6759_s0 + $0x78] ss:$28 sps:$4 sm:$0xff]   ;;  %v5754_v22 = vld [vmem:[%s6759_s0 + $0xac] ss:$28 sps:$4 sm:$0xff]  }
 0x12b   :  { %4498 = vmatmul.mubr.msk.bf16.gmra.mrb[12].mxu0 %vm1974_vm0, %v6111_v23  ;;  %4506 = vmatmul.mubr.msk.bf16.gmra.mrb[12].mxu1 %vm1974_vm0, %v6111_v23 }
 0x12c   :  { %2410 = vmatprep.mubr.bf16.mxu0 %v5794_v54  ;;  %2862 = vmatprep.mubr.bf16.mxu1 %v5794_v54 }
 0x12d   :  { %4573 = vmatpush3.bf16.msra.mxu0 %v5609_v25  ;;  %4636 = vmatprep.subr.bf16.mxu1 %v5617_v26  ;;  %v5755_v25 = vld [vmem:[%s6759_s0 + $0xb4] ss:$28 sps:$4 sm:$0xff]   ;;  %v5633_v26 = vld [vmem:[#allocation2 + $0x5d8] ss:$20 sps:$4 sm:$0xff]  }
 0x12e   :  { %4574 = vmatprep.subr.bf16.mxu0 %v5615_v27  ;;  %4637 = vmatpush3.bf16.msra.mxu1 %v5618_v28  ;;  %v5634_v27 = vld [vmem:[#allocation2 + $0x740] ss:$20 sps:$4 sm:$0xff]  }
 0x12f   :  { %4638 = vmatprep.subr.bf16.mxu1 %v5619_v29  ;;  %v5635_v28 = vld [vmem:[#allocation2 + $0x600] ss:$20 sps:$4 sm:$0xff]   ;;  %v5636_v29 = vld [vmem:[#allocation2 + $0x768] ss:$20 sps:$4 sm:$0xff]  }
 0x131   :  { %4575 = vmatpush3.bf16.msra.mxu0 %v5616_v30  ;;  %v5756_v30 = vld [vmem:[%s6759_s0 + $0xa8] ss:$28 sps:$4 sm:$0xff]  }
 0x132   :  { %4639 = vmatpush3.bf16.msra.mxu1 %v5620_v32  ;;  %4688 = vmatprep.subr.bf16.mxu0 %v5621_v33  ;;  %v5757_v32 = vld [vmem:[%s6759_s0 + $0xb0] ss:$28 sps:$4 sm:$0xff]   ;;  %v5758_v33 = vld [vmem:[%s6759_s0 + $0xe4] ss:$28 sps:$4 sm:$0xff]  }
 0x133   :  { %4499 = vmatmul.mubr.msk.bf16.gmra.mrb[16].mxu0 %vm1974_vm0, %v6122_v35  ;;  %4507 = vmatmul.mubr.msk.bf16.gmra.mrb[16].mxu1 %vm1974_vm0, %v6122_v35 }
 0x134   :  { %2420 = vmatprep.mubr.bf16.mxu0 %v5794_v54  ;;  %2872 = vmatprep.mubr.bf16.mxu1 %v5794_v54 }
 0x135   :  { %4905 = vmatprep.subr.bf16.mxu1 %v5631_v36 }
 0x13b   :  { %4500 = vmatmul.mubr.msk.bf16.gmra.mrb[20].mxu0 %vm1974_vm0, %v6133_v38  ;;  %4508 = vmatmul.mubr.msk.bf16.gmra.mrb[20].mxu1 %vm1974_vm0, %v6133_v38 }
 0x13c   :  { %2430 = vmatprep.mubr.bf16.mxu0 %v5794_v54  ;;  %2882 = vmatprep.mubr.bf16.mxu1 %v5794_v54 }
 0x143   :  { %4501 = vmatmul.mubr.msk.bf16.gmra.mrb[24].mxu0 %vm1974_vm0, %v6144_v39  ;;  %4509 = vmatmul.mubr.msk.bf16.gmra.mrb[24].mxu1 %vm1974_vm0, %v6144_v39 }
 0x144   :  { %2440 = vmatprep.mubr.bf16.mxu0 %v5794_v54  ;;  %2892 = vmatprep.mubr.bf16.mxu1 %v5794_v54  ;;  %v5743_v54 = vld [vmem:[%s6759_s0 + $0xc] ss:$28 sps:$4 sm:$0xff]  }
 0x14b   :  { %4502 = vmatmul.mubr.msk.bf16.gmra.mrb[28].mxu0 %vm1974_vm0, %v6155_v40  ;;  %4510 = vmatmul.mubr.msk.bf16.gmra.mrb[28].mxu1 %vm1974_vm0, %v6155_v40 }
 0x14c   :  { %2935 = vmatprep.mubr.bf16.mxu0 %v5742_v56  ;;  %3032 = vmatprep.mubr.bf16.mxu1 %v5743_v54  ;;  %v5637_v56 = vld [vmem:[#allocation2 + $0x628] ss:$20 sps:$4 sm:$0xff]   ;;  %v5639_v54 = vld [vmem:[%s6762_s3 + $0xc0] sm:$0xff]  }
 0x153   :  { %2936 = vmatmul.mubr.bf16.vlgmr.msra.gmra.mrb[32].mxu0 %v5744_v60  ;;  %3033 = vmatmul.mubr.bf16.vlgmr.msra.gmra.mrb[32].mxu1 %v5745_v61  ;;  %v5762_v60 = vld [vmem:[%s6759_s0 + $0x118] ss:$28 sps:$4 sm:$0xff]  }
 0x154   :  { %4689 = vmatpush3.bf16.msra.mxu0 %v5622_v57  ;;  %2943 = vmatprep.mubr.bf16.mxu0 %v5746_v63  ;;  %v5760_v57 = vld [vmem:[%s6759_s0 + $0xe0] ss:$28 sps:$4 sm:$0xff]   ;;  %v5763_v61 = vld [vmem:[%s6759_s0 + $0x154] ss:$28 sps:$4 sm:$0xff]  }
 0x155   :  { %4690 = vmatprep.subr.bf16.mxu0 %v5623_v58  ;;  %3040 = vmatprep.mubr.bf16.mxu1 %v5747_v3  ;;  %v5761_v58 = vld [vmem:[%s6759_s0 + $0x11c] ss:$28 sps:$4 sm:$0xff]  }
 0x156   :  { %4906 = vmatpush3.bf16.msra.mxu1 %v5631_v36  ;;  %v5759_v36 = vld [vmem:[%s6759_s0 + $0xec] ss:$28 sps:$4 sm:$0xff]   ;;  %v5651_v63 = vld [vmem:[%s6762_s3 + $0xd8] sm:$0xff]  }
 0x157   :  { %4761 = vmatprep.subr.bf16.mxu1 %v5638_v62  ;;  %v5650_v62 = vld [vmem:[%s6762_s3 + $0x58] sm:$0xff]  }
 0x158   :  { %4691 = vmatpush3.bf16.msra.mxu0 %v5624_v2  ;;  %v5652_v2 = vld [vmem:[%s6762_s3 + $0x18] sm:$0xff]  }
 0x159   :  { %4692 = vmatprep.subr.bf16.mxu0 %v5625_v5  ;;  %v5653_v3 = vld [vmem:[%s6762_s3 + $0x98] sm:$0xff]   ;;  %v5658_v5 = vld [vmem:[%s6762_s3 + $0x68] sm:$0xff]  }
 0x15b   :  { %2944 = vmatmul.mubr.bf16.gmra.mrb[36].mxu0 %v5748_v8  ;;  %3041 = vmatmul.mubr.bf16.gmra.mrb[36].mxu1 %v5749_v9  ;;  %v5661_v8 = vld [vmem:[%s6762_s3 + $0xa8] sm:$0xff]   ;;  %v5666_v9 = vld [vmem:[%s6762_s3 + $0x78] sm:$0xff]  }
 0x15c   :  { %2951 = vmatprep.mubr.bf16.mxu0 %v5750_v10  ;;  %3048 = vmatprep.mubr.bf16.mxu1 %v5751_v13  ;;  %v5667_v10 = vld [vmem:[%s6762_s3 + $0xf8] sm:$0xff]  }
 0x15d   :  { %4693 = vmatpush3.bf16.msra.mxu0 %v5626_v6  ;;  %v5659_v6 = vld [vmem:[%s6762_s3 + $0xe8] sm:$0xff]   ;;  %v5668_v13 = vld [vmem:[%s6762_s3 + $0x38] sm:$0xff]  }
 0x15e   :  { %4694 = vmatprep.subr.bf16.mxu0 %v5627_v7  ;;  %v5660_v7 = vld [vmem:[%s6762_s3 + $0x28] sm:$0xff]  }
 0x161   :  { %4695 = vmatpush3.bf16.msra.mxu0 %v5628_v15  ;;  %v5669_v15 = vld [vmem:[%s6762_s3 + $0xb8] sm:$0xff]  }
 0x162   :  { %4696 = vmatprep.subr.bf16.mxu0 %v5629_v16 }
 0x163   :  { %2952 = vmatmul.mubr.bf16.gmra.mrb[40].mxu0 %v5752_v19  ;;  %3049 = vmatmul.mubr.bf16.gmra.mrb[40].mxu1 %v5753_v20 }
 0x164   :  { %2959 = vmatprep.mubr.bf16.mxu0 %v5754_v22  ;;  %3056 = vmatprep.mubr.bf16.mxu1 %v5755_v25 }
 0x165   :  { %4697 = vmatpush3.bf16.msra.mxu0 %v5630_v17 }
 0x166   :  { %4698 = vmatprep.subr.bf16.mxu0 %v5632_v18 }
 0x169   :  { %4699 = vmatpush3.bf16.msra.mxu0 %v5633_v26 }
 0x16a   :  { %4700 = vmatprep.subr.bf16.mxu0 %v5634_v27 }
 0x16b   :  { %2960 = vmatmul.mubr.bf16.gmra.mrb[44].mxu0 %v5756_v30  ;;  %3057 = vmatmul.mubr.bf16.gmra.mrb[44].mxu1 %v5757_v32 }
 0x16c   :  { %2967 = vmatprep.mubr.bf16.mxu0 %v5758_v33  ;;  %3064 = vmatprep.mubr.bf16.mxu1 %v5759_v36 }
 0x16d   :  { %4701 = vmatpush3.bf16.msra.mxu0 %v5635_v28 }
 0x16e   :  { %4702 = vmatprep.subr.bf16.mxu0 %v5636_v29 }
 0x171   :  { %4703 = vmatpush3.bf16.msra.mxu0 %v5637_v56 }
 0x172   :  { %4825 = vmatprep.subr.bf16.mxu0 %v5639_v54 }
 0x173   :  { %2968 = vmatmul.mubr.bf16.gmra.mrb[48].mxu0 %v5760_v57  ;;  %3065 = vmatmul.mubr.bf16.gmra.mrb[48].mxu1 %v5915_v59  ;;  %v5764_v59 = vld [vmem:[%s6759_s0 + $0x150] ss:$28 sps:$4 sm:$0xff]  }
 0x174   :  { %2975 = vmatprep.mubr.bf16.mxu0 %v5761_v58  ;;  %3072 = vmatprep.mubr.bf16.mxu1 %v5920_v1  ;;  %v5765_v1 = vld [vmem:[%s6759_s0 + $0x18c] ss:$28 sps:$4 sm:$0xff]  }
 0x17b   :  { %2976 = vmatmul.mubr.bf16.gmra.mrb[52].mxu0 %v5762_v60  ;;  %3073 = vmatmul.mubr.bf16.gmra.mrb[52].mxu1 %v5927_v4  ;;  %v5766_v4 = vld [vmem:[%s6759_s0 + $0x188] ss:$28 sps:$4 sm:$0xff]  }
 0x17c   :  { %2983 = vmatprep.mubr.bf16.mxu0 %v5763_v61  ;;  %3080 = vmatprep.mubr.bf16.mxu1 %v5934_v11  ;;  %v5640_v11 = vld [vmem:[%s6762_s3] sm:$0xff]  }
 0x183   :  { %2984 = vmatmul.mubr.bf16.gmra.mrb[56].mxu0 %v5764_v59  ;;  %3081 = vmatmul.mubr.bf16.gmra.mrb[56].mxu1 %v5941_v14  ;;  %v5641_v14 = vld [vmem:[%s6762_s3 + $0x80] sm:$0xff]  }
 0x184   :  { %2991 = vmatprep.mubr.bf16.mxu0 %v5765_v1  ;;  %3088 = vmatprep.mubr.bf16.mxu1 %v5948_v21  ;;  %v5642_v21 = vld [vmem:[%s6762_s3 + $0x48] sm:$0xff]  }
 0x18b   :  { %2992 = vmatmul.mubr.bf16.gmra.mrb[60].mxu0 %v5766_v4  ;;  %3089 = vmatmul.mubr.bf16.gmra.mrb[60].mxu1 %v5955_v24  ;;  %v5643_v24 = vld [vmem:[%s6762_s3 + $0xc8] sm:$0xff]  }
 0x18c   :  { %3129 = vmatprep.mubr.bf16.mxu0 %v5962_v31  ;;  %4907 = vmatprep.mubr.msk.bf16.mxu1 %vm1974_vm0, %v6078_v55  ;;  %v5644_v31 = vld [vmem:[%s6762_s3 + $0x8] sm:$0xff]  }
 0x18d   :  { %v5645_v55 = vld [vmem:[%s6762_s3 + $0x88] sm:$0xff]  }
 0x193   :  { %3130 = vmatmul.mubr.bf16.vlgmr.msra.gmra.mrb[64].mxu0 %v5969_v34  ;;  %4908 = vmatmul.mubr.msk.bf16.vlgmr.msra.gmra.mrb[64].mxu1 %vm1974_vm0, %v6089_v0  ;;  %v5646_v34 = vld [vmem:[%s6762_s3 + $0x50] sm:$0xff]  }
 0x194   :  { %3137 = vmatprep.mubr.bf16.mxu0 %v5976_v37  ;;  %4911 = vmatprep.mubr.msk.bf16.mxu1 %vm1974_vm0, %v6100_v12  ;;  %v5647_v37 = vld [vmem:[%s6762_s3 + $0xd0] sm:$0xff]  }
 0x195   :  { %4762 = vmatpush3.bf16.msra.mxu1 %v5640_v11  ;;  %4826 = vmatpush3.bf16.msra.mxu0 %v5641_v14  ;;  %v5648_v0 = vld [vmem:[%s6762_s3 + $0x10] sm:$0xff]  }
 0x196   :  { %4763 = vmatprep.subr.bf16.mxu1 %v5642_v21  ;;  %4827 = vmatprep.subr.bf16.mxu0 %v5643_v24  ;;  %v5649_v12 = vld [vmem:[%s6762_s3 + $0x90] sm:$0xff]  }
 0x199   :  { %4764 = vmatpush3.bf16.msra.mxu1 %v5644_v31  ;;  %4828 = vmatpush3.bf16.msra.mxu0 %v5645_v55 }
 0x19a   :  { %4765 = vmatprep.subr.bf16.mxu1 %v5646_v34  ;;  %4829 = vmatprep.subr.bf16.mxu0 %v5647_v37 }
 0x19b   :  { %3138 = vmatmul.mubr.bf16.gmra.mrb[68].mxu0 %v5985_v41  ;;  %4912 = vmatmul.mubr.msk.bf16.gmra.mrb[68].mxu1 %vm1974_vm0, %v6111_v23  ;;  %v5654_v41 = vld [vmem:[%s6762_s3 + $0x60] sm:$0xff]  }
 0x19c   :  { %3145 = vmatprep.mubr.bf16.mxu0 %v5990_v42  ;;  %4915 = vmatprep.mubr.msk.bf16.mxu1 %vm1974_vm0, %v6122_v35  ;;  %v5655_v42 = vld [vmem:[%s6762_s3 + $0xe0] sm:$0xff]  }
 0x19d   :  { %4766 = vmatpush3.bf16.msra.mxu1 %v5648_v0  ;;  %4830 = vmatpush3.bf16.msra.mxu0 %v5649_v12  ;;  %v5656_v23 = vld [vmem:[%s6762_s3 + $0x20] sm:$0xff]  }
 0x19e   :  { %4767 = vmatprep.subr.bf16.mxu1 %v5650_v62  ;;  %4831 = vmatprep.subr.bf16.mxu0 %v5651_v63  ;;  %v5657_v35 = vld [vmem:[%s6762_s3 + $0xa0] sm:$0xff]  }
 0x1a1   :  { %4768 = vmatpush3.bf16.msra.mxu1 %v5652_v2  ;;  %4832 = vmatpush3.bf16.msra.mxu0 %v5653_v3  ;;  %v5671_v2 = vld [vmem:[%s6762_s3 + $0x108] sm:$0xff]  }
 0x1a2   :  { %4769 = vmatprep.subr.bf16.mxu1 %v5654_v41  ;;  %4833 = vmatprep.subr.bf16.mxu0 %v5655_v42 }
 0x1a3   :  { %3146 = vmatmul.mubr.bf16.gmra.mrb[72].mxu0 %v5999_v43  ;;  %4916 = vmatmul.mubr.msk.bf16.gmra.mrb[72].mxu1 %vm1974_vm0, %v6133_v38  ;;  %v5662_v43 = vld [vmem:[%s6762_s3 + $0x70] sm:$0xff]  }
 0x1a4   :  { %3153 = vmatprep.mubr.bf16.mxu0 %v6004_v44  ;;  %4919 = vmatprep.mubr.msk.bf16.mxu1 %vm1974_vm0, %v6144_v39  ;;  %v5663_v44 = vld [vmem:[%s6762_s3 + $0xf0] sm:$0xff]  }
 0x1a5   :  { %4770 = vmatpush3.bf16.msra.mxu1 %v5656_v23  ;;  %4834 = vmatpush3.bf16.msra.mxu0 %v5657_v35  ;;  %v5664_v38 = vld [vmem:[%s6762_s3 + $0x30] sm:$0xff]  }
 0x1a6   :  { %4771 = vmatprep.subr.bf16.mxu1 %v5658_v5  ;;  %4835 = vmatprep.subr.bf16.mxu0 %v5659_v6  ;;  %v5665_v39 = vld [vmem:[%s6762_s3 + $0xb0] sm:$0xff]  }
 0x1a9   :  { %4772 = vmatpush3.bf16.msra.mxu1 %v5660_v7  ;;  %4836 = vmatpush3.bf16.msra.mxu0 %v5661_v8 }
 0x1aa   :  { %4773 = vmatprep.subr.bf16.mxu1 %v5662_v43  ;;  %4837 = vmatprep.subr.bf16.mxu0 %v5663_v44 }
 0x1ab   :  { %3154 = vmatmul.mubr.bf16.gmra.mrb[76].mxu0 %v6013_v45  ;;  %4920 = vmatmul.mubr.msk.bf16.gmra.mrb[76].mxu1 %vm1974_vm0, %v6155_v40  ;;  %v5670_v45 = vld [vmem:[%s6762_s3 + $0x100] sm:$0xff]  }
 0x1ac   :  { %3161 = vmatprep.mubr.bf16.mxu0 %v6018_v46  ;;  %v395_v46 = vlaneseq }
 0x1ad   :  { %4774 = vmatpush3.bf16.msra.mxu1 %v5664_v38  ;;  %4838 = vmatpush3.bf16.msra.mxu0 %v5665_v39 }
 0x1ae   :  { %4775 = vmatprep.subr.bf16.mxu1 %v5666_v9  ;;  %4839 = vmatprep.subr.bf16.mxu0 %v5667_v10  ;;  %v6374_v40 = vshrl.u32 %v395_v46, 7  ;;  %v5672_v10 = vld [vmem:[%s6762_s3 + $0x110] sm:$0xff]  }
 0x1b1   :  { %4776 = vmatpush3.bf16.msra.mxu1 %v5668_v13  ;;  %4840 = vmatpush3.bf16.msra.mxu0 %v5669_v15 }
 0x1b2   :  { %4923 = vmatprep.subr.bf16.mxu1 %v5670_v45 }
 0x1b3   :  { %3162 = vmatmul.mubr.bf16.gmra.mrb[80].mxu0 %v6027_v47  ;;  %v397_v47 = vsub.s32 0, %v6374_v40 }
 0x1b4   :  { %3169 = vmatprep.mubr.bf16.mxu0 %v6032_v48  ;;  %v405_v48 = vsub.s32 2, %v6374_v40 }
 0x1bb   :  { %3170 = vmatmul.mubr.bf16.gmra.mrb[84].mxu0 %v6041_v49  ;;  %v6381_v49 = vld [vmem:[%s6761_s2] sm:$0x1f] }
 0x1bc   :  { %3177 = vmatprep.mubr.bf16.mxu0 %v6046_v50  ;;  %v401_v50 = vsub.s32 1, %v6374_v40 }
 0x1be   :  { %v6392_v16 = vrot.slane %v6381_v49, %v401_v50 }
 0x1c3   :  { %3178 = vmatmul.mubr.bf16.gmra.mrb[88].mxu0 %v6055_v51  ;;  %v409_v51 = vsub.s32 3, %v6374_v40 }
 0x1c4   :  { %3185 = vmatprep.mubr.bf16.mxu0 %v6060_v52  ;;  %v6386_v52 = vrot.slane %v6381_v49, %v397_v47 }
 0x1c5   :  { %v6395_v17 = vrot.slane %v6381_v49, %v409_v51 }
 0x1cb   :  { %3186 = vmatmul.mubr.bf16.gmra.mrb[92].mxu0 %v6069_v53  ;;  %v6389_v53 = vrot.slane %v6381_v49, %v405_v48 }
 0x1e6   :  { %v2372_v18 = vpop.f32.mrb[0].mxu0  ;;  %v2824_v19 = vpop.f32.mrb[0].mxu1 }
 0x1e7   :  { %v4955_v20 = vadd.f32 %v2372_v18, %v6386_v52  ;;  %v4987_v22 = vadd.f32 %v2824_v19, %v6389_v53  ;;  %v2374_v25 = vpop.f32.mrb[1].mxu0  ;;  %v2826_v26 = vpop.f32.mrb[1].mxu1 }
 0x1e8   :  { %v4956_v27 = vadd.f32 %v2374_v25, %v6392_v16  ;;  %v4988_v28 = vadd.f32 %v2826_v26, %v6395_v17  ;;  %v2376_v29 = vpop.f32.mrb[2].mxu0  ;;  %v2828_v30 = vpop.f32.mrb[2].mxu1 }
 0x1e9   :  { %v4957_v32 = vadd.f32 %v2376_v29, %v6386_v52  ;;  %v4989_v33 = vadd.f32 %v2828_v30, %v6389_v53  ;;  %v2378_v36 = vpop.f32.mrb[3].mxu0  ;;  %v2830_v56 = vpop.f32.mrb[3].mxu1  ;;  %v3291_v58 = vmax.f32 %v4955_v20, 0.0  ;;  %v3293_v60 = vmax.f32 %v4987_v22, 0.0 }
 0x1ea   :  { %v4958_v54 = vadd.f32 %v2378_v36, %v6392_v16  ;;  %v4990_v57 = vadd.f32 %v2830_v56, %v6395_v17  ;;  %v3292_v1 = vmax.f32 %v4956_v27, 0.0  ;;  %v3294_v4 = vmax.f32 %v4988_v28, 0.0  ;;  %v5673_v27 = vld [vmem:[%s6762_s3 + $0x118] sm:$0xff]  }
 0x1eb   :  { %v3296_v61 = vmax.f32 %v4957_v32, 0.0  ;;  %v3298_v59 = vmax.f32 %v4989_v33, 0.0 }
 0x1ec   :  { %v3297_v11 = vmax.f32 %v4958_v54, 0.0  ;;  %v3299_v14 = vmax.f32 %v4990_v57, 0.0 }
 0x1ed   :  { %v3371_v21 = vpack.c.bf16 %v3296_v61, %v3291_v58  ;;  %v3373_v24 = vpack.c.bf16 %v3298_v59, %v3293_v60 }
 0x1ee   :  { %v3372_v31 = vpack.c.bf16 %v3297_v11, %v3292_v1  ;;  %v3374_v55 = vpack.c.bf16 %v3299_v14, %v3294_v4  ;;  %v2382_v34 = vpop.f32.mrb[4].mxu0  ;;  %v2834_v37 = vpop.f32.mrb[4].mxu1  ;;  %v5674_v4 = vld [vmem:[%s6762_s3 + $0x120] sm:$0xff]  }
 0x1ef   :  { %v4959_v0 = vadd.f32 %v2382_v34, %v6386_v52  ;;  %v4991_v12 = vadd.f32 %v2834_v37, %v6389_v53  ;;  %v2384_v62 = vpop.f32.mrb[5].mxu0  ;;  %v2836_v63 = vpop.f32.mrb[5].mxu1 }
 0x1f0   :  { %v4960_v3 = vadd.f32 %v2384_v62, %v6392_v16  ;;  %v4992_v41 = vadd.f32 %v2836_v63, %v6395_v17  ;;  %v2386_v42 = vpop.f32.mrb[6].mxu0  ;;  %v2838_v23 = vpop.f32.mrb[6].mxu1  ;;  %3770 = vmatprep.mubr.bf16.mxu1 %v3372_v31  ;;  %3867 = vmatprep.mubr.bf16.mxu0 %v3374_v55 }
 0x1f1   :  { %v4961_v35 = vadd.f32 %v2386_v42, %v6386_v52  ;;  %v4993_v5 = vadd.f32 %v2838_v23, %v6389_v53  ;;  %v2388_v6 = vpop.f32.mrb[7].mxu0  ;;  %v2840_v7 = vpop.f32.mrb[7].mxu1  ;;  %3771 = vmatmul.mubr.bf16.vlgmr.msra.gmra.mrb[80].mxu1 %v3371_v21  ;;  %3868 = vmatmul.mubr.bf16.vlgmr.msra.gmra.mrb[96].mxu0 %v3373_v24  ;;  %v3301_v44 = vmax.f32 %v4959_v0, 0.0  ;;  %v3303_v38 = vmax.f32 %v4991_v12, 0.0 }
 0x1f2   :  { %v4962_v8 = vadd.f32 %v2388_v6, %v6392_v16  ;;  %v4994_v43 = vadd.f32 %v2840_v7, %v6395_v17  ;;  %4924 = vmatpush3.bf16.msra.mxu1 %v5670_v45  ;;  %v3302_v13 = vmax.f32 %v4960_v3, 0.0  ;;  %v3304_v15 = vmax.f32 %v4992_v41, 0.0  ;;  %v5675_v41 = vld [vmem:[%s6762_s3 + $0x128] sm:$0xff]  }
 0x1f3   :  { %v3306_v39 = vmax.f32 %v4961_v35, 0.0  ;;  %v3308_v9 = vmax.f32 %v4993_v5, 0.0  ;;  %4925 = vmatprep.subr.bf16.mxu1 %v5671_v2 }
 0x1f4   :  { %v3307_v46 = vmax.f32 %v4962_v8, 0.0  ;;  %v3309_v47 = vmax.f32 %v4994_v43, 0.0 }
 0x1f5   :  { %v3376_v48 = vpack.c.bf16 %v3306_v39, %v3301_v44  ;;  %v3378_v50 = vpack.c.bf16 %v3308_v9, %v3303_v38 }
 0x1f6   :  { %v3377_v51 = vpack.c.bf16 %v3307_v46, %v3302_v13  ;;  %v3379_v18 = vpack.c.bf16 %v3309_v47, %v3304_v15  ;;  %v2392_v19 = vpop.f32.mrb[8].mxu0  ;;  %v2844_v20 = vpop.f32.mrb[8].mxu1  ;;  %4926 = vmatpush3.bf16.msra.mxu1 %v5671_v2  ;;  %v5676_v15 = vld [vmem:[%s6762_s3 + $0x130] sm:$0xff]  }
 0x1f7   :  { %v4963_v45 = vadd.f32 %v2392_v19, %v6386_v52  ;;  %v4995_v22 = vadd.f32 %v2844_v20, %v6389_v53  ;;  %v2394_v25 = vpop.f32.mrb[9].mxu0  ;;  %v2846_v26 = vpop.f32.mrb[9].mxu1  ;;  %4927 = vmatprep.subr.bf16.mxu1 %v5672_v10 }
 0x1f8   :  { %v4964_v28 = vadd.f32 %v2394_v25, %v6392_v16  ;;  %v4996_v29 = vadd.f32 %v2846_v26, %v6395_v17  ;;  %v2396_v30 = vpop.f32.mrb[10].mxu0  ;;  %v2848_v32 = vpop.f32.mrb[10].mxu1  ;;  %3778 = vmatprep.mubr.bf16.mxu1 %v3377_v51  ;;  %3875 = vmatprep.mubr.bf16.mxu0 %v3379_v18 }
 0x1f9   :  { %v4965_v33 = vadd.f32 %v2396_v30, %v6386_v52  ;;  %v4997_v36 = vadd.f32 %v2848_v32, %v6389_v53  ;;  %v2398_v56 = vpop.f32.mrb[11].mxu0  ;;  %v2850_v54 = vpop.f32.mrb[11].mxu1  ;;  %3779 = vmatmul.mubr.bf16.gmra.mrb[84].mxu1 %v3376_v48  ;;  %3876 = vmatmul.mubr.bf16.gmra.mrb[100].mxu0 %v3378_v50  ;;  %v3311_v60 = vmax.f32 %v4963_v45, 0.0  ;;  %v3313_v61 = vmax.f32 %v4995_v22, 0.0 }
 0x1fa   :  { %v4966_v57 = vadd.f32 %v2398_v56, %v6392_v16  ;;  %v4998_v58 = vadd.f32 %v2850_v54, %v6395_v17  ;;  %4928 = vmatpush3.bf16.msra.mxu1 %v5672_v10  ;;  %v3312_v11 = vmax.f32 %v4964_v28, 0.0  ;;  %v3314_v14 = vmax.f32 %v4996_v29, 0.0  ;;  %v5677_v29 = vld [vmem:[%s6762_s3 + $0x138] sm:$0xff]  }
 0x1fb   :  { %v3316_v59 = vmax.f32 %v4965_v33, 0.0  ;;  %v3318_v1 = vmax.f32 %v4997_v36, 0.0  ;;  %4929 = vmatprep.subr.bf16.mxu1 %v5673_v27 }
 0x1fc   :  { %v3317_v21 = vmax.f32 %v4966_v57, 0.0  ;;  %v3319_v24 = vmax.f32 %v4998_v58, 0.0 }
 0x1fd   :  { %v3381_v31 = vpack.c.bf16 %v3316_v59, %v3311_v60  ;;  %v3383_v55 = vpack.c.bf16 %v3318_v1, %v3313_v61 }
 0x1fe   :  { %v3382_v34 = vpack.c.bf16 %v3317_v21, %v3312_v11  ;;  %v3384_v37 = vpack.c.bf16 %v3319_v24, %v3314_v14  ;;  %v2402_v0 = vpop.f32.mrb[12].mxu0  ;;  %v2854_v12 = vpop.f32.mrb[12].mxu1  ;;  %4930 = vmatpush3.bf16.msra.mxu1 %v5673_v27 }
 0x1ff   :  { %v4967_v62 = vadd.f32 %v2402_v0, %v6386_v52  ;;  %v4999_v63 = vadd.f32 %v2854_v12, %v6389_v53  ;;  %v2404_v2 = vpop.f32.mrb[13].mxu0  ;;  %v2856_v3 = vpop.f32.mrb[13].mxu1  ;;  %4931 = vmatprep.subr.bf16.mxu1 %v5674_v4 }
 0x200   :  { %v4968_v42 = vadd.f32 %v2404_v2, %v6392_v16  ;;  %v5000_v23 = vadd.f32 %v2856_v3, %v6395_v17  ;;  %v2406_v35 = vpop.f32.mrb[14].mxu0  ;;  %v2858_v5 = vpop.f32.mrb[14].mxu1  ;;  %3786 = vmatprep.mubr.bf16.mxu1 %v3382_v34  ;;  %3883 = vmatprep.mubr.bf16.mxu0 %v3384_v37 }
 0x201   :  { %v4969_v6 = vadd.f32 %v2406_v35, %v6386_v52  ;;  %v5001_v7 = vadd.f32 %v2858_v5, %v6389_v53  ;;  %v2408_v8 = vpop.f32.mrb[15].mxu0  ;;  %v2860_v43 = vpop.f32.mrb[15].mxu1  ;;  %3787 = vmatmul.mubr.bf16.gmra.mrb[88].mxu1 %v3381_v31  ;;  %3884 = vmatmul.mubr.bf16.gmra.mrb[104].mxu0 %v3383_v55  ;;  %v3321_v39 = vmax.f32 %v4967_v62, 0.0  ;;  %v3323_v9 = vmax.f32 %v4999_v63, 0.0 }
 0x202   :  { %v4970_v44 = vadd.f32 %v2408_v8, %v6392_v16  ;;  %v5002_v38 = vadd.f32 %v2860_v43, %v6395_v17  ;;  %4932 = vmatpush3.bf16.msra.mxu1 %v5674_v4  ;;  %v3322_v46 = vmax.f32 %v4968_v42, 0.0  ;;  %v3324_v47 = vmax.f32 %v5000_v23, 0.0 }
 0x203   :  { %v3326_v10 = vmax.f32 %v4969_v6, 0.0  ;;  %v3328_v13 = vmax.f32 %v5001_v7, 0.0  ;;  %4933 = vmatprep.subr.bf16.mxu1 %v5675_v41 }
 0x204   :  { %v3327_v48 = vmax.f32 %v4970_v44, 0.0  ;;  %v3329_v50 = vmax.f32 %v5002_v38, 0.0 }
 0x205   :  { %v3386_v51 = vpack.c.bf16 %v3326_v10, %v3321_v39  ;;  %v3388_v18 = vpack.c.bf16 %v3328_v13, %v3323_v9 }
 0x206   :  { %v3387_v19 = vpack.c.bf16 %v3327_v48, %v3322_v46  ;;  %v3389_v20 = vpack.c.bf16 %v3329_v50, %v3324_v47  ;;  %v2412_v45 = vpop.f32.mrb[16].mxu0  ;;  %v2864_v22 = vpop.f32.mrb[16].mxu1  ;;  %4934 = vmatpush3.bf16.msra.mxu1 %v5675_v41 }
 0x207   :  { %v4971_v25 = vadd.f32 %v2412_v45, %v6386_v52  ;;  %v5003_v26 = vadd.f32 %v2864_v22, %v6389_v53  ;;  %v2414_v27 = vpop.f32.mrb[17].mxu0  ;;  %v2866_v28 = vpop.f32.mrb[17].mxu1  ;;  %4935 = vmatprep.subr.bf16.mxu1 %v5676_v15 }
 0x208   :  { %v4972_v30 = vadd.f32 %v2414_v27, %v6392_v16  ;;  %v5004_v32 = vadd.f32 %v2866_v28, %v6395_v17  ;;  %v2416_v33 = vpop.f32.mrb[18].mxu0  ;;  %v2868_v36 = vpop.f32.mrb[18].mxu1  ;;  %3794 = vmatprep.mubr.bf16.mxu1 %v3387_v19  ;;  %3891 = vmatprep.mubr.bf16.mxu0 %v3389_v20 }
 0x209   :  { %v4973_v56 = vadd.f32 %v2416_v33, %v6386_v52  ;;  %v5005_v54 = vadd.f32 %v2868_v36, %v6389_v53  ;;  %v2418_v57 = vpop.f32.mrb[19].mxu0  ;;  %v2870_v58 = vpop.f32.mrb[19].mxu1  ;;  %3795 = vmatmul.mubr.bf16.gmra.mrb[92].mxu1 %v3386_v51  ;;  %3892 = vmatmul.mubr.bf16.gmra.mrb[108].mxu0 %v3388_v18  ;;  %v3331_v59 = vmax.f32 %v4971_v25, 0.0  ;;  %v3333_v1 = vmax.f32 %v5003_v26, 0.0 }
 0x20a   :  { %v4974_v60 = vadd.f32 %v2418_v57, %v6392_v16  ;;  %v5006_v61 = vadd.f32 %v2870_v58, %v6395_v17  ;;  %4936 = vmatpush3.bf16.msra.mxu1 %v5676_v15  ;;  %v3332_v14 = vmax.f32 %v4972_v30, 0.0  ;;  %v3334_v21 = vmax.f32 %v5004_v32, 0.0 }
 0x20b   :  { %v3336_v4 = vmax.f32 %v4973_v56, 0.0  ;;  %v3338_v11 = vmax.f32 %v5005_v54, 0.0  ;;  %4937 = vmatprep.subr.bf16.mxu1 %v5677_v29 }
 0x20c   :  { %v3337_v24 = vmax.f32 %v4974_v60, 0.0  ;;  %v3339_v31 = vmax.f32 %v5006_v61, 0.0 }
 0x20d   :  { %v3391_v55 = vpack.c.bf16 %v3336_v4, %v3331_v59  ;;  %v3393_v34 = vpack.c.bf16 %v3338_v11, %v3333_v1 }
 0x20e   :  { %v3392_v37 = vpack.c.bf16 %v3337_v24, %v3332_v14  ;;  %v3394_v0 = vpack.c.bf16 %v3339_v31, %v3334_v21  ;;  %v2422_v12 = vpop.f32.mrb[20].mxu0  ;;  %v2874_v62 = vpop.f32.mrb[20].mxu1  ;;  %4938 = vmatpush3.bf16.msra.mxu1 %v5677_v29 }
 0x20f   :  { %v4975_v63 = vadd.f32 %v2422_v12, %v6386_v52  ;;  %v5007_v2 = vadd.f32 %v2874_v62, %v6389_v53  ;;  %v2424_v3 = vpop.f32.mrb[21].mxu0  ;;  %v2876_v41 = vpop.f32.mrb[21].mxu1 }
 0x210   :  { %v4976_v42 = vadd.f32 %v2424_v3, %v6392_v16  ;;  %v5008_v23 = vadd.f32 %v2876_v41, %v6395_v17  ;;  %v2426_v35 = vpop.f32.mrb[22].mxu0  ;;  %v2878_v5 = vpop.f32.mrb[22].mxu1  ;;  %3802 = vmatprep.mubr.bf16.mxu1 %v3392_v37  ;;  %3899 = vmatprep.mubr.bf16.mxu0 %v3394_v0 }
 0x211   :  { %v4977_v6 = vadd.f32 %v2426_v35, %v6386_v52  ;;  %v5009_v7 = vadd.f32 %v2878_v5, %v6389_v53  ;;  %v2428_v8 = vpop.f32.mrb[23].mxu0  ;;  %v2880_v43 = vpop.f32.mrb[23].mxu1  ;;  %3803 = vmatmul.mubr.bf16.gmra.mrb[96].mxu1 %v3391_v55  ;;  %3900 = vmatmul.mubr.bf16.gmra.mrb[112].mxu0 %v3393_v34  ;;  %v3341_v39 = vmax.f32 %v4975_v63, 0.0  ;;  %v3343_v9 = vmax.f32 %v5007_v2, 0.0 }
 0x212   :  { %v4978_v44 = vadd.f32 %v2428_v8, %v6392_v16  ;;  %v5010_v38 = vadd.f32 %v2880_v43, %v6395_v17  ;;  %v3342_v15 = vmax.f32 %v4976_v42, 0.0  ;;  %v3344_v46 = vmax.f32 %v5008_v23, 0.0 }
 0x213   :  { %v3346_v10 = vmax.f32 %v4977_v6, 0.0  ;;  %v3348_v13 = vmax.f32 %v5009_v7, 0.0 }
 0x214   :  { %v3347_v47 = vmax.f32 %v4978_v44, 0.0  ;;  %v3349_v48 = vmax.f32 %v5010_v38, 0.0  ;;  %v413_v44 = vsub.s32 4, %v6374_v40 }
 0x215   :  { %v3396_v50 = vpack.c.bf16 %v3346_v10, %v3341_v39  ;;  %v3398_v51 = vpack.c.bf16 %v3348_v13, %v3343_v9 }
 0x216   :  { %v3397_v18 = vpack.c.bf16 %v3347_v47, %v3342_v15  ;;  %v3399_v19 = vpack.c.bf16 %v3349_v48, %v3344_v46  ;;  %v2432_v20 = vpop.f32.mrb[24].mxu0  ;;  %v2884_v45 = vpop.f32.mrb[24].mxu1 }
 0x217   :  { %v4979_v22 = vadd.f32 %v2432_v20, %v6386_v52  ;;  %v5011_v25 = vadd.f32 %v2884_v45, %v6389_v53  ;;  %v2434_v26 = vpop.f32.mrb[25].mxu0  ;;  %v2886_v27 = vpop.f32.mrb[25].mxu1 }
 0x218   :  { %v4980_v28 = vadd.f32 %v2434_v26, %v6392_v16  ;;  %v5012_v29 = vadd.f32 %v2886_v27, %v6395_v17  ;;  %v2436_v30 = vpop.f32.mrb[26].mxu0  ;;  %v2888_v32 = vpop.f32.mrb[26].mxu1  ;;  %3810 = vmatprep.mubr.bf16.mxu1 %v3397_v18  ;;  %3907 = vmatprep.mubr.bf16.mxu0 %v3399_v19  ;;  %v6484_v18 = vrot.slane %v6381_v49, %v413_v44 }
 0x219   :  { %v4981_v33 = vadd.f32 %v2436_v30, %v6386_v52  ;;  %v5013_v36 = vadd.f32 %v2888_v32, %v6389_v53  ;;  %v2438_v56 = vpop.f32.mrb[27].mxu0  ;;  %v2890_v54 = vpop.f32.mrb[27].mxu1  ;;  %3811 = vmatmul.mubr.bf16.gmra.mrb[100].mxu1 %v3396_v50  ;;  %3908 = vmatmul.mubr.bf16.gmra.mrb[116].mxu0 %v3398_v51  ;;  %v3351_v60 = vmax.f32 %v4979_v22, 0.0  ;;  %v3353_v61 = vmax.f32 %v5011_v25, 0.0 }
 0x21a   :  { %v4982_v57 = vadd.f32 %v2438_v56, %v6392_v16  ;;  %v5014_v58 = vadd.f32 %v2890_v54, %v6395_v17  ;;  %v3352_v4 = vmax.f32 %v4980_v28, 0.0  ;;  %v3354_v11 = vmax.f32 %v5012_v29, 0.0 }
 0x21b   :  { %v3356_v59 = vmax.f32 %v4981_v33, 0.0  ;;  %v3358_v1 = vmax.f32 %v5013_v36, 0.0 }
 0x21c   :  { %v3357_v14 = vmax.f32 %v4982_v57, 0.0  ;;  %v3359_v21 = vmax.f32 %v5014_v58, 0.0 }
 0x21d   :  { %v3401_v24 = vpack.c.bf16 %v3356_v59, %v3351_v60  ;;  %v3403_v31 = vpack.c.bf16 %v3358_v1, %v3353_v61 }
 0x21e   :  { %v3402_v55 = vpack.c.bf16 %v3357_v14, %v3352_v4  ;;  %v3404_v34 = vpack.c.bf16 %v3359_v21, %v3354_v11  ;;  %v2442_v37 = vpop.f32.mrb[28].mxu0  ;;  %v2894_v0 = vpop.f32.mrb[28].mxu1 }
 0x21f   :  { %v4983_v12 = vadd.f32 %v2442_v37, %v6386_v52  ;;  %v5015_v62 = vadd.f32 %v2894_v0, %v6389_v53  ;;  %v2444_v63 = vpop.f32.mrb[29].mxu0  ;;  %v2896_v2 = vpop.f32.mrb[29].mxu1 }
 0x220   :  { %v4984_v3 = vadd.f32 %v2444_v63, %v6392_v16  ;;  %v5016_v41 = vadd.f32 %v2896_v2, %v6395_v17  ;;  %v2446_v42 = vpop.f32.mrb[30].mxu0  ;;  %v2898_v23 = vpop.f32.mrb[30].mxu1  ;;  %3818 = vmatprep.mubr.bf16.mxu1 %v3402_v55  ;;  %3915 = vmatprep.mubr.bf16.mxu0 %v3404_v34 }
 0x221   :  { %v4985_v35 = vadd.f32 %v2446_v42, %v6386_v52  ;;  %v5017_v5 = vadd.f32 %v2898_v23, %v6389_v53  ;;  %v2448_v6 = vpop.f32.mrb[31].mxu0  ;;  %v2900_v7 = vpop.f32.mrb[31].mxu1  ;;  %3819 = vmatmul.mubr.bf16.gmra.mrb[104].mxu1 %v3401_v24  ;;  %3916 = vmatmul.mubr.bf16.gmra.mrb[120].mxu0 %v3403_v31  ;;  %v3361_v38 = vmax.f32 %v4983_v12, 0.0  ;;  %v3363_v39 = vmax.f32 %v5015_v62, 0.0 }
 0x222   :  { %v4986_v8 = vadd.f32 %v2448_v6, %v6392_v16  ;;  %v5018_v43 = vadd.f32 %v2900_v7, %v6395_v17  ;;  %v3362_v13 = vmax.f32 %v4984_v3, 0.0  ;;  %v3364_v15 = vmax.f32 %v5016_v41, 0.0 }
 0x223   :  { %v3366_v9 = vmax.f32 %v4985_v35, 0.0  ;;  %v3368_v10 = vmax.f32 %v5017_v5, 0.0 }
 0x224   :  { %v3367_v46 = vmax.f32 %v4986_v8, 0.0  ;;  %v3369_v52 = vmax.f32 %v5018_v43, 0.0 }
 0x225   :  { %v3406_v47 = vpack.c.bf16 %v3366_v9, %v3361_v38  ;;  %v3408_v53 = vpack.c.bf16 %v3368_v10, %v3363_v39 }
 0x226   :  { %v3407_v48 = vpack.c.bf16 %v3367_v46, %v3362_v13  ;;  %v3409_v50 = vpack.c.bf16 %v3369_v52, %v3364_v15  ;;  %v4576_v51 = vpop.f32.mrb[32].mxu0  ;;  %v4640_v16 = vpop.f32.mrb[32].mxu1 }
 0x227   :  { %v4577_v17 = vpop.f32.mrb[33].mxu0  ;;  %v4641_v19 = vpop.f32.mrb[33].mxu1 }
 0x228   :  { %v4578_v40 = vadd.f32 %v4577_v17, %v4576_v51  ;;  %v4579_v20 = vpop.f32.mrb[34].mxu0  ;;  %3826 = vmatprep.mubr.bf16.mxu1 %v3407_v48  ;;  %3923 = vmatprep.mubr.bf16.mxu0 %v3409_v50  ;;  %v4642_v45 = vadd.f32 %v4641_v19, %v4640_v16  ;;  %v4643_v22 = vpop.f32.mrb[34].mxu1 }
 0x229   :  { %v4580_v25 = vpop.f32.mrb[35].mxu0  ;;  %3827 = vmatmul.mubr.bf16.gmra.mrb[108].mxu1 %v3406_v47  ;;  %3924 = vmatmul.mubr.bf16.gmra.mrb[124].mxu0 %v3408_v53  ;;  %v4644_v26 = vpop.f32.mrb[35].mxu1 }
 0x22a   :  { %v2938_v27 = vadd.f32 %v4578_v40, %v6484_v18  ;;  %v4581_v28 = vadd.f32 %v4580_v25, %v4579_v20  ;;  %v4645_v29 = vadd.f32 %v4644_v26, %v4643_v22 }
 0x22c   :  { %v2941_v49 = vadd.f32 %v4581_v28, %v6484_v18  ;;  %v6488_v30 = vadd.f32 %v4642_v45, %v2938_v27 }
 0x22e   :  { %v6490_v32 = vadd.f32 %v4645_v29, %v2941_v49  ;;  %v4582_v33 = vpop.f32.mrb[36].mxu0  ;;  %v4646_v36 = vpop.f32.mrb[36].mxu1 }
 0x22f   :  { %v4583_v56 = vpop.f32.mrb[37].mxu0  ;;  %v4647_v54 = vpop.f32.mrb[37].mxu1 }
 0x230   :  { %v4584_v57 = vadd.f32 %v4583_v56, %v4582_v33  ;;  %v4585_v58 = vpop.f32.mrb[38].mxu0  ;;  %v4648_v60 = vadd.f32 %v4647_v54, %v4646_v36  ;;  %v4649_v61 = vpop.f32.mrb[38].mxu1 }
 0x231   :  { %v4586_v59 = vpop.f32.mrb[39].mxu0  ;;  %v4650_v1 = vpop.f32.mrb[39].mxu1 }
 0x232   :  { %v2946_v4 = vadd.f32 %v4584_v57, %v6484_v18  ;;  %v4587_v11 = vadd.f32 %v4586_v59, %v4585_v58  ;;  %v4651_v14 = vadd.f32 %v4650_v1, %v4649_v61 }
 0x234   :  { %v2949_v21 = vadd.f32 %v4587_v11, %v6484_v18  ;;  %v6494_v24 = vadd.f32 %v4648_v60, %v2946_v4 }
 0x236   :  { %v6496_v31 = vadd.f32 %v4651_v14, %v2949_v21  ;;  %v4588_v55 = vpop.f32.mrb[40].mxu0  ;;  %v4652_v34 = vpop.f32.mrb[40].mxu1 }
 0x237   :  { %v4589_v37 = vpop.f32.mrb[41].mxu0  ;;  %v4653_v0 = vpop.f32.mrb[41].mxu1 }
 0x238   :  { %v4590_v12 = vadd.f32 %v4589_v37, %v4588_v55  ;;  %v4591_v62 = vpop.f32.mrb[42].mxu0  ;;  %v4654_v63 = vadd.f32 %v4653_v0, %v4652_v34  ;;  %v4655_v2 = vpop.f32.mrb[42].mxu1 }
 0x239   :  { %v4592_v3 = vpop.f32.mrb[43].mxu0  ;;  %v4656_v41 = vpop.f32.mrb[43].mxu1 }
 0x23a   :  { %v2954_v42 = vadd.f32 %v4590_v12, %v6484_v18  ;;  %v4593_v23 = vadd.f32 %v4592_v3, %v4591_v62  ;;  %v4657_v35 = vadd.f32 %v4656_v41, %v4655_v2 }
 0x23c   :  { %v2957_v5 = vadd.f32 %v4593_v23, %v6484_v18  ;;  %v6500_v6 = vadd.f32 %v4654_v63, %v2954_v42 }
 0x23e   :  { %v6502_v7 = vadd.f32 %v4657_v35, %v2957_v5  ;;  %v4594_v8 = vpop.f32.mrb[44].mxu0  ;;  %v4658_v43 = vpop.f32.mrb[44].mxu1 }
 0x23f   :  { %v4595_v44 = vpop.f32.mrb[45].mxu0  ;;  %v4659_v38 = vpop.f32.mrb[45].mxu1 }
 0x240   :  { %v4596_v39 = vadd.f32 %v4595_v44, %v4594_v8  ;;  %v4597_v9 = vpop.f32.mrb[46].mxu0  ;;  %v4660_v10 = vadd.f32 %v4659_v38, %v4658_v43  ;;  %v4661_v13 = vpop.f32.mrb[46].mxu1 }
 0x241   :  { %v4598_v15 = vpop.f32.mrb[47].mxu0  ;;  %v4662_v46 = vpop.f32.mrb[47].mxu1 }
 0x242   :  { %v2962_v52 = vadd.f32 %v4596_v39, %v6484_v18  ;;  %v4599_v47 = vadd.f32 %v4598_v15, %v4597_v9  ;;  %v4663_v53 = vadd.f32 %v4662_v46, %v4661_v13 }
 0x244   :  { %v2965_v48 = vadd.f32 %v4599_v47, %v6484_v18  ;;  %v6506_v50 = vadd.f32 %v4660_v10, %v2962_v52 }
 0x246   :  { %v6508_v51 = vadd.f32 %v4663_v53, %v2965_v48  ;;  %v4600_v16 = vpop.f32.mrb[48].mxu0  ;;  %v4664_v17 = vpop.f32.mrb[48].mxu1 }
 0x247   :  { %v4601_v19 = vpop.f32.mrb[49].mxu0  ;;  %v4665_v40 = vpop.f32.mrb[49].mxu1 }
 0x248   :  { %v4602_v20 = vadd.f32 %v4601_v19, %v4600_v16  ;;  %v4603_v45 = vpop.f32.mrb[50].mxu0  ;;  %v4666_v22 = vadd.f32 %v4665_v40, %v4664_v17  ;;  %v4667_v25 = vpop.f32.mrb[50].mxu1 }
 0x249   :  { %v4604_v26 = vpop.f32.mrb[51].mxu0  ;;  %v4668_v27 = vpop.f32.mrb[51].mxu1 }
 0x24a   :  { %v2970_v28 = vadd.f32 %v4602_v20, %v6484_v18  ;;  %v4605_v29 = vadd.f32 %v4604_v26, %v4603_v45  ;;  %v4669_v49 = vadd.f32 %v4668_v27, %v4667_v25 }
 0x24c   :  { %v2973_v33 = vadd.f32 %v4605_v29, %v6484_v18  ;;  %v6512_v36 = vadd.f32 %v4666_v22, %v2970_v28 }
 0x24e   :  { %v6514_v56 = vadd.f32 %v4669_v49, %v2973_v33  ;;  %v4606_v54 = vpop.f32.mrb[52].mxu0  ;;  %v4670_v57 = vpop.f32.mrb[52].mxu1 }
 0x24f   :  { %v4607_v58 = vpop.f32.mrb[53].mxu0  ;;  %v4671_v60 = vpop.f32.mrb[53].mxu1 }
 0x250   :  { %v4608_v61 = vadd.f32 %v4607_v58, %v4606_v54  ;;  %v4609_v59 = vpop.f32.mrb[54].mxu0  ;;  %v4672_v1 = vadd.f32 %v4671_v60, %v4670_v57  ;;  %v4673_v4 = vpop.f32.mrb[54].mxu1 }
 0x251   :  { %v4610_v11 = vpop.f32.mrb[55].mxu0  ;;  %v4674_v14 = vpop.f32.mrb[55].mxu1 }
 0x252   :  { %v2978_v21 = vadd.f32 %v4608_v61, %v6484_v18  ;;  %v4611_v55 = vadd.f32 %v4610_v11, %v4609_v59  ;;  %v4675_v34 = vadd.f32 %v4674_v14, %v4673_v4 }
 0x254   :  { %v2981_v37 = vadd.f32 %v4611_v55, %v6484_v18  ;;  %v6518_v0 = vadd.f32 %v4672_v1, %v2978_v21 }
 0x256   :  { %v6520_v12 = vadd.f32 %v4675_v34, %v2981_v37  ;;  %v4612_v62 = vpop.f32.mrb[56].mxu0  ;;  %v4676_v63 = vpop.f32.mrb[56].mxu1 }
 0x257   :  { %v4613_v2 = vpop.f32.mrb[57].mxu0  ;;  %v4677_v3 = vpop.f32.mrb[57].mxu1 }
 0x258   :  { %v4614_v41 = vadd.f32 %v4613_v2, %v4612_v62  ;;  %v4615_v42 = vpop.f32.mrb[58].mxu0  ;;  %v4678_v23 = vadd.f32 %v4677_v3, %v4676_v63  ;;  %v4679_v35 = vpop.f32.mrb[58].mxu1 }
 0x259   :  { %v4616_v5 = vpop.f32.mrb[59].mxu0  ;;  %v4680_v8 = vpop.f32.mrb[59].mxu1 }
 0x25a   :  { %v2986_v43 = vadd.f32 %v4614_v41, %v6484_v18  ;;  %v4617_v44 = vadd.f32 %v4616_v5, %v4615_v42  ;;  %v4681_v38 = vadd.f32 %v4680_v8, %v4679_v35 }
 0x25c   :  { %v2989_v39 = vadd.f32 %v4617_v44, %v6484_v18  ;;  %v6524_v9 = vadd.f32 %v4678_v23, %v2986_v43 }
 0x25e   :  { %v6526_v10 = vadd.f32 %v4681_v38, %v2989_v39  ;;  %v4618_v13 = vpop.f32.mrb[60].mxu0  ;;  %v4682_v15 = vpop.f32.mrb[60].mxu1 }
 0x25f   :  { %v4619_v46 = vpop.f32.mrb[61].mxu0  ;;  %v4683_v52 = vpop.f32.mrb[61].mxu1 }
 0x260   :  { %v4620_v47 = vadd.f32 %v4619_v46, %v4618_v13  ;;  %v4621_v53 = vpop.f32.mrb[62].mxu0  ;;  %v4684_v48 = vadd.f32 %v4683_v52, %v4682_v15  ;;  %v4685_v16 = vpop.f32.mrb[62].mxu1 }
 0x261   :  { %v4622_v17 = vpop.f32.mrb[63].mxu0  ;;  %v4686_v19 = vpop.f32.mrb[63].mxu1 }
 0x262   :  { %v2994_v40 = vadd.f32 %v4620_v47, %v6484_v18  ;;  %v4623_v20 = vadd.f32 %v4622_v17, %v4621_v53  ;;  %v4687_v45 = vadd.f32 %v4686_v19, %v4685_v16 }
 0x264   :  { %v2997_v22 = vadd.f32 %v4623_v20, %v6484_v18  ;;  %v6530_v25 = vadd.f32 %v4684_v48, %v2994_v40 }
 0x266   :  { %v6532_v26 = vadd.f32 %v4687_v45, %v2997_v22  ;;  %v4704_v27 = vpop.f32.mrb[64].mxu0  ;;  %v4909_v28 = vpop.f32.mrb[64].mxu1 }
 0x267   :  { %v4705_v29 = vpop.f32.mrb[65].mxu0  ;;  %v3228_v49 = vpop.f32.mrb[65].mxu1 }
 0x268   :  { %v4706_v33 = vadd.f32 %v4705_v29, %v4704_v27  ;;  %v4707_v54 = vpop.f32.mrb[66].mxu0  ;;  %v4910_v57 = vpop.f32.mrb[66].mxu1 }
 0x269   :  { %v4708_v58 = vpop.f32.mrb[67].mxu0  ;;  %v3231_v60 = vpop.f32.mrb[67].mxu1 }
 0x26a   :  { %v4709_v61 = vadd.f32 %v4708_v58, %v4707_v54  ;;  %v3132_v59 = vadd.f32 %v4706_v33, %v6488_v30 }
 0x26c   :  { %v3229_v1 = vadd.f32 %v3228_v49, %v3132_v59  ;;  %v3135_v4 = vadd.f32 %v4709_v61, %v6490_v32 }
 0x26e   :  { %v3232_v18 = vadd.f32 %v3231_v60, %v3135_v4  ;;  %v4710_v11 = vpop.f32.mrb[68].mxu0  ;;  %v4913_v14 = vpop.f32.mrb[68].mxu1  ;;  %v3295_v34 = vmax.f32 %v3229_v1, 0.0 }
 0x26f   :  { %v4711_v21 = vpop.f32.mrb[69].mxu0  ;;  %v3244_v55 = vpop.f32.mrb[69].mxu1 }
 0x270   :  { %v3300_v37 = vmax.f32 %v3232_v18, 0.0  ;;  %v4712_v62 = vadd.f32 %v4711_v21, %v4710_v11  ;;  %v4713_v63 = vpop.f32.mrb[70].mxu0  ;;  %v4914_v2 = vpop.f32.mrb[70].mxu1 }
 0x271   :  { %v4714_v3 = vpop.f32.mrb[71].mxu0  ;;  %v3247_v41 = vpop.f32.mrb[71].mxu1 }
 0x272   :  { %v3375_v42 = vpack.c.bf16 %v3300_v37, %v3295_v34  ;;  %v3140_v23 = vadd.f32 %v4712_v62, %v6494_v24  ;;  %v4715_v35 = vadd.f32 %v4714_v3, %v4713_v63 }
 0x274   :  { %v3237_v30 = vadd.f32 %v4909_v28, %v3140_v23  ;;  %v3143_v5 = vadd.f32 %v4715_v35, %v6496_v31  ;;  %4939 = vmatprep.mubr.bf16.mxu1 %v3375_v42 }
 0x276   :  { %v3240_v32 = vadd.f32 %v4910_v57, %v3143_v5  ;;  %v4716_v8 = vpop.f32.mrb[72].mxu0  ;;  %v4917_v43 = vpop.f32.mrb[72].mxu1  ;;  %v3305_v39 = vmax.f32 %v3237_v30, 0.0 }
 0x277   :  { %v4717_v44 = vpop.f32.mrb[73].mxu0  ;;  %v3260_v38 = vpop.f32.mrb[73].mxu1 }
 0x278   :  { %v3310_v13 = vmax.f32 %v3240_v32, 0.0  ;;  %v4718_v15 = vadd.f32 %v4717_v44, %v4716_v8  ;;  %v4719_v46 = vpop.f32.mrb[74].mxu0  ;;  %v4918_v52 = vpop.f32.mrb[74].mxu1 }
 0x279   :  { %v4720_v47 = vpop.f32.mrb[75].mxu0  ;;  %v3263_v53 = vpop.f32.mrb[75].mxu1 }
 0x27a   :  { %v3380_v48 = vpack.c.bf16 %v3310_v13, %v3305_v39  ;;  %v4721_v16 = vadd.f32 %v4720_v47, %v4719_v46  ;;  %v3148_v24 = vadd.f32 %v4718_v15, %v6500_v6 }
 0x27c   :  { %v3245_v17 = vadd.f32 %v3244_v55, %v3148_v24  ;;  %4940 = vmatmul.mubr.bf16.vlgmr.msra.gmra.mrb[112].mxu1 %v3380_v48  ;;  %v3151_v31 = vadd.f32 %v4721_v16, %v6502_v7 }
 0x27e   :  { %v3248_v19 = vadd.f32 %v3247_v41, %v3151_v31  ;;  %v4722_v40 = vpop.f32.mrb[76].mxu0  ;;  %v6540_v20 = vpop.f32.mrb[76].mxu1  ;;  %v3315_v27 = vmax.f32 %v3245_v17, 0.0 }
 0x27f   :  { %v4723_v45 = vpop.f32.mrb[77].mxu0  ;;  %v3276_v22 = vpop.f32.mrb[77].mxu1 }
 0x280   :  { %v3320_v28 = vmax.f32 %v3248_v19, 0.0  ;;  %v4724_v29 = vadd.f32 %v4723_v45, %v4722_v40  ;;  %v4725_v49 = vpop.f32.mrb[78].mxu0  ;;  %v6542_v33 = vpop.f32.mrb[78].mxu1 }
 0x281   :  { %v4726_v54 = vpop.f32.mrb[79].mxu0  ;;  %v3279_v57 = vpop.f32.mrb[79].mxu1 }
 0x282   :  { %v3385_v58 = vpack.c.bf16 %v3320_v28, %v3315_v27  ;;  %v3156_v6 = vadd.f32 %v4724_v29, %v6506_v50  ;;  %v4727_v60 = vadd.f32 %v4726_v54, %v4725_v49 }
 0x284   :  { %v3253_v61 = vadd.f32 %v4913_v14, %v3156_v6  ;;  %v3159_v7 = vadd.f32 %v4727_v60, %v6508_v51  ;;  %4943 = vmatprep.mubr.bf16.mxu1 %v3385_v58 }
 0x286   :  { %v3256_v59 = vadd.f32 %v4914_v2, %v3159_v7  ;;  %v4728_v1 = vpop.f32.mrb[80].mxu0  ;;  %v3325_v18 = vmax.f32 %v3253_v61, 0.0  ;;  %v6559_v61 = vld [vmem:[%s6763_s4] ss:$0 sm:$0xff] }
 0x287   :  { %v4729_v4 = vpop.f32.mrb[81].mxu0 }
 0x288   :  { %v3330_v11 = vmax.f32 %v3256_v59, 0.0  ;;  %v4730_v21 = vadd.f32 %v4729_v4, %v4728_v1  ;;  %v4731_v55 = vpop.f32.mrb[82].mxu0 }
 0x289   :  { %v4732_v34 = vpop.f32.mrb[83].mxu0 }
 0x28a   :  { %v4733_v37 = vadd.f32 %v4732_v34, %v4731_v55  ;;  %v3164_v62 = vadd.f32 %v4730_v21, %v6512_v36  ;;  %v3390_v63 = vpack.c.bf16 %v3330_v11, %v3325_v18 }
 0x28c   :  { %v3261_v3 = vadd.f32 %v3260_v38, %v3164_v62  ;;  %4944 = vmatmul.mubr.bf16.gmra.mrb[116].mxu1 %v3390_v63  ;;  %v3167_v50 = vadd.f32 %v4733_v37, %v6514_v56 }
 0x28e   :  { %v3264_v14 = vadd.f32 %v3263_v53, %v3167_v50  ;;  %v4734_v41 = vpop.f32.mrb[84].mxu0  ;;  %v3335_v42 = vmax.f32 %v3261_v3, 0.0 }
 0x28f   :  { %v4735_v51 = vpop.f32.mrb[85].mxu0 }
 0x290   :  { %v3340_v2 = vmax.f32 %v3264_v14, 0.0  ;;  %v4736_v23 = vadd.f32 %v4735_v51, %v4734_v41  ;;  %v4737_v35 = vpop.f32.mrb[86].mxu0 }
 0x291   :  { %v4738_v30 = vpop.f32.mrb[87].mxu0 }
 0x292   :  { %v3395_v5 = vpack.c.bf16 %v3340_v2, %v3335_v42  ;;  %v3172_v32 = vadd.f32 %v4736_v23, %v6518_v0  ;;  %v4739_v8 = vadd.f32 %v4738_v30, %v4737_v35 }
 0x294   :  { %v3269_v44 = vadd.f32 %v4917_v43, %v3172_v32  ;;  %v3175_v36 = vadd.f32 %v4739_v8, %v6520_v12  ;;  %4947 = vmatprep.mubr.bf16.mxu1 %v3395_v5 }
 0x296   :  { %v3272_v38 = vadd.f32 %v4918_v52, %v3175_v36  ;;  %v4740_v39 = vpop.f32.mrb[88].mxu0  ;;  %v3345_v56 = vmax.f32 %v3269_v44, 0.0 }
 0x297   :  { %v4741_v13 = vpop.f32.mrb[89].mxu0 }
 0x298   :  { %v3350_v15 = vmax.f32 %v3272_v38, 0.0  ;;  %v4742_v46 = vadd.f32 %v4741_v13, %v4740_v39  ;;  %v4743_v47 = vpop.f32.mrb[90].mxu0 }
 0x299   :  { %v4744_v53 = vpop.f32.mrb[91].mxu0 }
 0x29a   :  { %v4745_v48 = vadd.f32 %v4744_v53, %v4743_v47  ;;  %v3180_v16 = vadd.f32 %v4742_v46, %v6524_v9  ;;  %v3400_v24 = vpack.c.bf16 %v3350_v15, %v3345_v56 }
 0x29c   :  { %v3277_v17 = vadd.f32 %v3276_v22, %v3180_v16  ;;  %4948 = vmatmul.mubr.bf16.gmra.mrb[120].mxu1 %v3400_v24  ;;  %v3183_v0 = vadd.f32 %v4745_v48, %v6526_v10 }
 0x29e   :  { %v3280_v43 = vadd.f32 %v3279_v57, %v3183_v0  ;;  %v4746_v31 = vpop.f32.mrb[92].mxu0  ;;  %v3355_v19 = vmax.f32 %v3277_v17, 0.0 }
 0x29f   :  { %v4747_v12 = vpop.f32.mrb[93].mxu0 }
 0x2a0   :  { %v3360_v52 = vmax.f32 %v3280_v43, 0.0  ;;  %v4748_v40 = vadd.f32 %v4747_v12, %v4746_v31  ;;  %v4749_v45 = vpop.f32.mrb[94].mxu0 }
 0x2a1   :  { %v4750_v27 = vpop.f32.mrb[95].mxu0 }
 0x2a2   :  { %v3405_v28 = vpack.c.bf16 %v3360_v52, %v3355_v19  ;;  %v3188_v29 = vadd.f32 %v4748_v40, %v6530_v25  ;;  %v4751_v49 = vadd.f32 %v4750_v27, %v4749_v45 }
 0x2a4   :  { %v3285_v54 = vadd.f32 %v6540_v20, %v3188_v29  ;;  %v3191_v9 = vadd.f32 %v4751_v49, %v6532_v26  ;;  %4951 = vmatprep.mubr.bf16.mxu1 %v3405_v28 }
 0x2a6   :  { %v3288_v22 = vadd.f32 %v6542_v33, %v3191_v9  ;;  %v3365_v10 = vmax.f32 %v3285_v54, 0.0 }
 0x2a8   :  { %v3370_v57 = vmax.f32 %v3288_v22, 0.0 }
 0x2aa   :  { %v3410_v58 = vpack.c.bf16 %v3370_v57, %v3365_v10 }
 0x2ac   :  { %4952 = vmatmul.mubr.bf16.gmra.mrb[124].mxu1 %v3410_v58 }
 0x2c4   :  { %v4777_v6 = vpop.f32.mrb[80].mxu1  ;;  %v4841_v60 = vpop.f32.mrb[96].mxu0 }
 0x2c5   :  { %v4778_v25 = vpop.f32.mrb[81].mxu1  ;;  %v4842_v7 = vpop.f32.mrb[97].mxu0 }
 0x2c6   :  { %v4779_v59 = vadd.f32 %v4778_v25, %v4777_v6  ;;  %v4843_v20 = vadd.f32 %v4842_v7, %v4841_v60  ;;  %v4780_v1 = vpop.f32.mrb[82].mxu1  ;;  %v4844_v26 = vpop.f32.mrb[98].mxu0 }
 0x2c7   :  { %v4781_v4 = vpop.f32.mrb[83].mxu1  ;;  %v4845_v18 = vpop.f32.mrb[99].mxu0 }
 0x2c8   :  { %v3773_v33 = vadd.f32 %v4779_v59, %v6559_v61  ;;  %v4782_v11 = vadd.f32 %v4781_v4, %v4780_v1  ;;  %v4846_v21 = vadd.f32 %v4845_v18, %v4844_v26 }
 0x2ca   :  { %v3776_v55 = vadd.f32 %v4782_v11, %v6559_v61  ;;  %v6563_v34 = vadd.f32 %v4843_v20, %v3773_v33 }
 0x2cc   :  { %v4783_v37 = vpop.f32.mrb[84].mxu1  ;;  %v4847_v62 = vpop.f32.mrb[100].mxu0  ;;  %v6565_v63 = vadd.f32 %v4846_v21, %v3776_v55 }
 0x2cd   :  { %v4784_v3 = vpop.f32.mrb[85].mxu1  ;;  %v4848_v50 = vpop.f32.mrb[101].mxu0 }
 0x2ce   :  { %v4785_v14 = vadd.f32 %v4784_v3, %v4783_v37  ;;  %v4849_v41 = vadd.f32 %v4848_v50, %v4847_v62  ;;  %v4786_v51 = vpop.f32.mrb[86].mxu1  ;;  %v4850_v42 = vpop.f32.mrb[102].mxu0 }
 0x2cf   :  { %v4787_v2 = vpop.f32.mrb[87].mxu1  ;;  %v4851_v23 = vpop.f32.mrb[103].mxu0 }
 0x2d0   :  { %v3781_v35 = vadd.f32 %v4785_v14, %v6559_v61  ;;  %v4788_v30 = vadd.f32 %v4787_v2, %v4786_v51  ;;  %v4852_v5 = vadd.f32 %v4851_v23, %v4850_v42 }
 0x2d2   :  { %v3784_v32 = vadd.f32 %v4788_v30, %v6559_v61  ;;  %v6569_v8 = vadd.f32 %v4849_v41, %v3781_v35 }
 0x2d4   :  { %v4789_v44 = vpop.f32.mrb[88].mxu1  ;;  %v4853_v36 = vpop.f32.mrb[104].mxu0  ;;  %v6571_v38 = vadd.f32 %v4852_v5, %v3784_v32 }
 0x2d5   :  { %v4790_v39 = vpop.f32.mrb[89].mxu1  ;;  %v4854_v13 = vpop.f32.mrb[105].mxu0 }
 0x2d6   :  { %v4791_v56 = vadd.f32 %v4790_v39, %v4789_v44  ;;  %v4855_v15 = vadd.f32 %v4854_v13, %v4853_v36  ;;  %v4792_v46 = vpop.f32.mrb[90].mxu1  ;;  %v4856_v47 = vpop.f32.mrb[106].mxu0 }
 0x2d7   :  { %v4793_v53 = vpop.f32.mrb[91].mxu1  ;;  %v4857_v48 = vpop.f32.mrb[107].mxu0 }
 0x2d8   :  { %v3789_v16 = vadd.f32 %v4791_v56, %v6559_v61  ;;  %v4794_v24 = vadd.f32 %v4793_v53, %v4792_v46  ;;  %v4858_v17 = vadd.f32 %v4857_v48, %v4856_v47 }
 0x2da   :  { %v3792_v0 = vadd.f32 %v4794_v24, %v6559_v61  ;;  %v6575_v43 = vadd.f32 %v4855_v15, %v3789_v16 }
 0x2dc   :  { %v4795_v31 = vpop.f32.mrb[92].mxu1  ;;  %v4859_v12 = vpop.f32.mrb[108].mxu0  ;;  %v6577_v19 = vadd.f32 %v4858_v17, %v3792_v0 }
 0x2dd   :  { %v4796_v52 = vpop.f32.mrb[93].mxu1  ;;  %v4860_v40 = vpop.f32.mrb[109].mxu0 }
 0x2de   :  { %v4797_v45 = vadd.f32 %v4796_v52, %v4795_v31  ;;  %v4861_v27 = vadd.f32 %v4860_v40, %v4859_v12  ;;  %v4798_v28 = vpop.f32.mrb[94].mxu1  ;;  %v4862_v29 = vpop.f32.mrb[110].mxu0 }
 0x2df   :  { %v4799_v49 = vpop.f32.mrb[95].mxu1  ;;  %v4863_v54 = vpop.f32.mrb[111].mxu0 }
 0x2e0   :  { %v3797_v9 = vadd.f32 %v4797_v45, %v6559_v61  ;;  %v4800_v22 = vadd.f32 %v4799_v49, %v4798_v28  ;;  %v4864_v10 = vadd.f32 %v4863_v54, %v4862_v29 }
 0x2e2   :  { %v3800_v57 = vadd.f32 %v4800_v22, %v6559_v61  ;;  %v6581_v58 = vadd.f32 %v4861_v27, %v3797_v9 }
 0x2e4   :  { %v4801_v6 = vpop.f32.mrb[96].mxu1  ;;  %v4865_v60 = vpop.f32.mrb[112].mxu0  ;;  %v6583_v25 = vadd.f32 %v4864_v10, %v3800_v57 }
 0x2e5   :  { %v4802_v7 = vpop.f32.mrb[97].mxu1  ;;  %v4866_v59 = vpop.f32.mrb[113].mxu0 }
 0x2e6   :  { %v4803_v20 = vadd.f32 %v4802_v7, %v4801_v6  ;;  %v4867_v1 = vadd.f32 %v4866_v59, %v4865_v60  ;;  %v4804_v26 = vpop.f32.mrb[98].mxu1  ;;  %v4868_v4 = vpop.f32.mrb[114].mxu0 }
 0x2e7   :  { %v4805_v18 = vpop.f32.mrb[99].mxu1  ;;  %v4869_v33 = vpop.f32.mrb[115].mxu0 }
 0x2e8   :  { %v3805_v11 = vadd.f32 %v4803_v20, %v6559_v61  ;;  %v4806_v21 = vadd.f32 %v4805_v18, %v4804_v26  ;;  %v4870_v55 = vadd.f32 %v4869_v33, %v4868_v4 }
 0x2ea   :  { %v3808_v37 = vadd.f32 %v4806_v21, %v6559_v61  ;;  %v6587_v62 = vadd.f32 %v4867_v1, %v3805_v11 }
 0x2ec   :  { %v4807_v3 = vpop.f32.mrb[100].mxu1  ;;  %v4871_v50 = vpop.f32.mrb[116].mxu0  ;;  %v6589_v14 = vadd.f32 %v4870_v55, %v3808_v37 }
 0x2ed   :  { %v4808_v41 = vpop.f32.mrb[101].mxu1  ;;  %v4872_v51 = vpop.f32.mrb[117].mxu0 }
 0x2ee   :  { %v4809_v42 = vadd.f32 %v4808_v41, %v4807_v3  ;;  %v4873_v2 = vadd.f32 %v4872_v51, %v4871_v50  ;;  %v4810_v23 = vpop.f32.mrb[102].mxu1  ;;  %v4874_v35 = vpop.f32.mrb[118].mxu0 }
 0x2ef   :  { %v4811_v30 = vpop.f32.mrb[103].mxu1  ;;  %v4875_v5 = vpop.f32.mrb[119].mxu0 }
 0x2f0   :  { %v3813_v32 = vadd.f32 %v4809_v42, %v6559_v61  ;;  %v4812_v44 = vadd.f32 %v4811_v30, %v4810_v23  ;;  %v4876_v36 = vadd.f32 %v4875_v5, %v4874_v35 }
 0x2f2   :  { %v3816_v39 = vadd.f32 %v4812_v44, %v6559_v61  ;;  %v3910_v13 = vadd.f32 %v4873_v2, %v3813_v32 }
 0x2f4   :  { %v4813_v56 = vpop.f32.mrb[104].mxu1  ;;  %v4877_v15 = vpop.f32.mrb[120].mxu0  ;;  %v3913_v46 = vadd.f32 %v4876_v36, %v3816_v39 }
 0x2f5   :  { %v4814_v47 = vpop.f32.mrb[105].mxu1  ;;  %v4878_v53 = vpop.f32.mrb[121].mxu0 }
 0x2f6   :  { %v4815_v48 = vadd.f32 %v4814_v47, %v4813_v56  ;;  %v4879_v16 = vadd.f32 %v4878_v53, %v4877_v15  ;;  %v4816_v24 = vpop.f32.mrb[106].mxu1  ;;  %v4880_v17 = vpop.f32.mrb[122].mxu0 }
 0x2f7   :  { %v4817_v0 = vpop.f32.mrb[107].mxu1  ;;  %v4881_v31 = vpop.f32.mrb[123].mxu0 }
 0x2f8   :  { %v3821_v12 = vadd.f32 %v4815_v48, %v6559_v61  ;;  %v4818_v52 = vadd.f32 %v4817_v0, %v4816_v24  ;;  %v4882_v40 = vadd.f32 %v4881_v31, %v4880_v17 }
 0x2fa   :  { %v3824_v45 = vadd.f32 %v4818_v52, %v6559_v61  ;;  %v3918_v27 = vadd.f32 %v4879_v16, %v3821_v12 }
 0x2fc   :  { %v4819_v28 = vpop.f32.mrb[108].mxu1  ;;  %v4883_v29 = vpop.f32.mrb[124].mxu0  ;;  %v3921_v49 = vadd.f32 %v4882_v40, %v3824_v45 }
 0x2fd   :  { %v4820_v54 = vpop.f32.mrb[109].mxu1  ;;  %v4884_v9 = vpop.f32.mrb[125].mxu0 }
 0x2fe   :  { %v4821_v22 = vadd.f32 %v4820_v54, %v4819_v28  ;;  %v4885_v10 = vadd.f32 %v4884_v9, %v4883_v29  ;;  %v4822_v57 = vpop.f32.mrb[110].mxu1  ;;  %v4886_v6 = vpop.f32.mrb[126].mxu0 }
 0x2ff   :  { %v4823_v60 = vpop.f32.mrb[111].mxu1  ;;  %v4887_v7 = vpop.f32.mrb[127].mxu0 }
 0x300   :  { %v3829_v59 = vadd.f32 %v4821_v22, %v6559_v61  ;;  %v4824_v20 = vadd.f32 %v4823_v60, %v4822_v57  ;;  %v4888_v1 = vadd.f32 %v4887_v7, %v4886_v6 }
 0x302   :  { %v3832_v26 = vadd.f32 %v4824_v20, %v6559_v61  ;;  %v3926_v4 = vadd.f32 %v4885_v10, %v3829_v59 }
 0x304   :  { %v3929_v18 = vadd.f32 %v4888_v1, %v3832_v26 }
 0x34f   :  { %v4941_v33 = vpop.f32.mrb[112].mxu1 }
 0x350   :  { %v3975_v11 = vadd.f32 %v4941_v33, %v6569_v8  ;;  %v3966_v21 = vpop.f32.mrb[113].mxu1 }
 0x351   :  { %v3967_v55 = vadd.f32 %v3966_v21, %v6563_v34  ;;  %v4942_v37 = vpop.f32.mrb[114].mxu1 }
 0x352   :  { %v3978_v3 = vadd.f32 %v4942_v37, %v6571_v38  ;;  %v3969_v50 = vpop.f32.mrb[115].mxu1  ;;  %4033 = vmax.xlane.f32.xlu1 %v3975_v11 }
 0x353   :  { %v3970_v41 = vadd.f32 %v3969_v50, %v6565_v63  ;;  %4029 = vmax.xlane.f32.xlu0 %v3967_v55 }
 0x356   :  { %4035 = vmax.xlane.f32.xlu1 %v3978_v3 }
 0x357   :  { %4031 = vmax.xlane.f32.xlu0 %v3970_v41 }
 0x35f   :  { %v4945_v51 = vpop.f32.mrb[116].mxu1 }
 0x360   :  { %v3991_v61 = vadd.f32 %v4945_v51, %v6581_v58  ;;  %v3982_v42 = vpop.f32.mrb[117].mxu1 }
 0x361   :  { %v6603_v2 = vadd.f32 %v3982_v42, %v6575_v43  ;;  %v4946_v8 = vpop.f32.mrb[118].mxu1 }
 0x362   :  { %v3994_v34 = vadd.f32 %v4946_v8, %v6583_v25  ;;  %v3985_v23 = vpop.f32.mrb[119].mxu1  ;;  %4041 = vmax.xlane.f32.xlu0 %v3991_v61 }
 0x363   :  { %v6607_v38 = vadd.f32 %v3985_v23, %v6577_v19 }
 0x364   :  { %4043 = vmax.xlane.f32.xlu1 %v3994_v34 }
 0x366   :  { %4037 = vmax.xlane.f32.xlu0 %v6603_v2 }
 0x368   :  { %4039 = vmax.xlane.f32.xlu1 %v6607_v38 }
 0x36f   :  { %v4949_v63 = vpop.f32.mrb[120].mxu1 }
 0x370   :  { %v6611_v35 = vadd.f32 %v4949_v63, %v3910_v13  ;;  %v3998_v58 = vpop.f32.mrb[121].mxu1 }
 0x371   :  { %v6614_v43 = vadd.f32 %v3998_v58, %v6587_v62  ;;  %v4950_v30 = vpop.f32.mrb[122].mxu1 }
 0x372   :  { %v6616_v5 = vadd.f32 %v4950_v30, %v3913_v46  ;;  %v4001_v25 = vpop.f32.mrb[123].mxu1  ;;  %4049 = vmax.xlane.f32.xlu0 %v6611_v35 }
 0x373   :  { %v6620_v19 = vadd.f32 %v4001_v25, %v6589_v14 }
 0x374   :  { %4051 = vmax.xlane.f32.xlu1 %v6616_v5 }
 0x376   :  { %4045 = vmax.xlane.f32.xlu0 %v6614_v43 }
 0x378   :  { %4047 = vmax.xlane.f32.xlu1 %v6620_v19 }
 0x37f   :  { %v4953_v32 = vpop.f32.mrb[124].mxu1 }
 0x380   :  { %v6625_v44 = vadd.f32 %v4953_v32, %v3926_v4  ;;  %v4014_v62 = vpop.f32.mrb[125].mxu1 }
 0x381   :  { %v6627_v36 = vadd.f32 %v4014_v62, %v3918_v27  ;;  %v4954_v39 = vpop.f32.mrb[126].mxu1 }
 0x382   :  { %v6629_v13 = vadd.f32 %v4954_v39, %v3929_v18  ;;  %v4017_v56 = vpop.f32.mrb[127].mxu1 }
 0x383   :  { %v6631_v15 = vadd.f32 %v4017_v56, %v3921_v49  ;;  %4053 = vmax.xlane.f32.xlu0 %v6627_v36 }
 0x385   :  { %4055 = vmax.xlane.f32.xlu1 %v6631_v15 }
 0x387   :  { %4057 = vmax.xlane.f32.xlu0 %v6625_v44 }
 0x389   :  { %4059 = vmax.xlane.f32.xlu1 %v6629_v13 }
 0x3df   :  { %v4034_v14 = vpop.xlane.xlu1 %4033 }
 0x3e0   :  { %v4063_v46 = vsub.f32 %v3975_v11, %v4034_v14  ;;  %v4030_v47 = vpop.xlane.xlu0 %4029 }
 0x3e1   :  { %v4061_v53 = vsub.f32 %v3967_v55, %v4030_v47 }
 0x3e2   :  { %v4081_v48 = vmul.f32 1.442695, %v4063_v46 }
 0x3e3   :  { %v4077_v16 = vmul.f32 1.442695, %v4061_v53  ;;  %v4036_v24 = vpop.xlane.xlu1 %4035 }
 0x3e4   :  { %5678 = vpow2.f32 %v4081_v48  ;;  %v4064_v17 = vsub.f32 %v3978_v3, %v4036_v24  ;;  %v4032_v0 = vpop.xlane.xlu0 %4031 }
 0x3e5   :  { %v4062_v31 = vsub.f32 %v3970_v41, %v4032_v0  ;;  %5680 = vpow2.f32 %v4077_v16 }
 0x3e6   :  { %v4083_v12 = vmul.f32 1.442695, %v4064_v17 }
 0x3e7   :  { %v4079_v52 = vmul.f32 1.442695, %v4062_v31 }
 0x3e8   :  { %5682 = vpow2.f32 %v4083_v12 }
 0x3e9   :  { %5684 = vpow2.f32 %v4079_v52 }
 0x3ee   :  { %v6637_v40 = vpop.eup %5678 }
 0x3ef   :  { %4113 = vadd.xlane.f32.xlu0 %v6637_v40  ;;  %v4042_v45 = vpop.xlane.xlu0 %4041  ;;  %v6640_v28 = vpop.eup %5680 }
 0x3f0   :  { %v4067_v27 = vsub.f32 %v3991_v61, %v4042_v45 }
 0x3f1   :  { %v4044_v29 = vpop.xlane.xlu1 %4043 }
 0x3f2   :  { %v6642_v49 = vpop.eup %5682  ;;  %v4089_v54 = vmul.f32 1.442695, %v4067_v27  ;;  %v4068_v9 = vsub.f32 %v3994_v34, %v4044_v29 }
 0x3f3   :  { %4115 = vadd.xlane.f32.xlu1 %v6642_v49  ;;  %4109 = vadd.xlane.f32.xlu0 %v6640_v28  ;;  %v4038_v22 = vpop.xlane.xlu0 %4037  ;;  %v6647_v60 = vpop.eup %5684 }
 0x3f4   :  { %5686 = vpow2.f32 %v4089_v54  ;;  %v4091_v10 = vmul.f32 1.442695, %v4068_v9  ;;  %v4065_v57 = vsub.f32 %v6603_v2, %v4038_v22 }
 0x3f5   :  { %v4040_v6 = vpop.xlane.xlu1 %4039 }
 0x3f6   :  { %5688 = vpow2.f32 %v4091_v10  ;;  %v4085_v7 = vmul.f32 1.442695, %v4065_v57  ;;  %v4066_v59 = vsub.f32 %v6607_v38, %v4040_v6 }
 0x3f7   :  { %4111 = vadd.xlane.f32.xlu1 %v6647_v60 }
 0x3f8   :  { %5690 = vpow2.f32 %v4085_v7  ;;  %v4087_v20 = vmul.f32 1.442695, %v4066_v59 }
 0x3fa   :  { %5692 = vpow2.f32 %v4087_v20 }
 0x3fe   :  { %v6651_v1 = vpop.eup %5686 }
 0x3ff   :  { %4121 = vadd.xlane.f32.xlu0 %v6651_v1  ;;  %v4050_v26 = vpop.xlane.xlu0 %4049 }
 0x400   :  { %v6654_v4 = vpop.eup %5688  ;;  %v4071_v18 = vsub.f32 %v6611_v35, %v4050_v26 }
 0x401   :  { %v4052_v33 = vpop.xlane.xlu1 %4051  ;;  %4123 = vadd.xlane.f32.xlu1 %v6654_v4 }
 0x402   :  { %v6658_v11 = vpop.eup %5690  ;;  %v4097_v21 = vmul.f32 1.442695, %v4071_v18  ;;  %v4072_v55 = vsub.f32 %v6616_v5, %v4052_v33 }
 0x403   :  { %4117 = vadd.xlane.f32.xlu0 %v6658_v11  ;;  %v4046_v37 = vpop.xlane.xlu0 %4045 }
 0x404   :  { %v6662_v3 = vpop.eup %5692  ;;  %5694 = vpow2.f32 %v4097_v21  ;;  %v4099_v50 = vmul.f32 1.442695, %v4072_v55  ;;  %v4069_v41 = vsub.f32 %v6614_v43, %v4046_v37 }
 0x405   :  { %v4048_v51 = vpop.xlane.xlu1 %4047  ;;  %4119 = vadd.xlane.f32.xlu1 %v6662_v3 }
 0x406   :  { %5696 = vpow2.f32 %v4099_v50  ;;  %v4093_v61 = vmul.f32 1.442695, %v4069_v41  ;;  %v4070_v42 = vsub.f32 %v6620_v19, %v4048_v51 }
 0x408   :  { %5698 = vpow2.f32 %v4093_v61  ;;  %v4095_v2 = vmul.f32 1.442695, %v4070_v42 }
 0x40a   :  { %5700 = vpow2.f32 %v4095_v2 }
 0x40e   :  { %v6667_v8 = vpop.eup %5694 }
 0x40f   :  { %4129 = vadd.xlane.f32.xlu0 %v6667_v8 }
 0x410   :  { %v6670_v34 = vpop.eup %5696  ;;  %v4054_v23 = vpop.xlane.xlu0 %4053 }
 0x411   :  { %v4073_v38 = vsub.f32 %v6627_v36, %v4054_v23  ;;  %4131 = vadd.xlane.f32.xlu1 %v6670_v34 }
 0x412   :  { %v6674_v63 = vpop.eup %5698  ;;  %v4056_v35 = vpop.xlane.xlu1 %4055 }
 0x413   :  { %v4101_v58 = vmul.f32 1.442695, %v4073_v38  ;;  %v4074_v43 = vsub.f32 %v6631_v15, %v4056_v35  ;;  %4125 = vadd.xlane.f32.xlu0 %v6674_v63 }
 0x414   :  { %v6678_v30 = vpop.eup %5700  ;;  %v4058_v5 = vpop.xlane.xlu0 %4057 }
 0x415   :  { %5702 = vpow2.f32 %v4101_v58  ;;  %v4103_v25 = vmul.f32 1.442695, %v4074_v43  ;;  %v4075_v19 = vsub.f32 %v6625_v44, %v4058_v5  ;;  %4127 = vadd.xlane.f32.xlu1 %v6678_v30 }
 0x416   :  { %v4060_v32 = vpop.xlane.xlu1 %4059 }
 0x417   :  { %5704 = vpow2.f32 %v4103_v25  ;;  %v4105_v62 = vmul.f32 1.442695, %v4075_v19  ;;  %v4076_v36 = vsub.f32 %v6629_v13, %v4060_v32 }
 0x419   :  { %5706 = vpow2.f32 %v4105_v62  ;;  %v4107_v39 = vmul.f32 1.442695, %v4076_v36 }
 0x41b   :  { %5708 = vpow2.f32 %v4107_v39 }
 0x41f   :  { %v6683_v56 = vpop.eup %5702 }
 0x420   :  { %4133 = vadd.xlane.f32.xlu0 %v6683_v56 }
 0x421   :  { %v6686_v15 = vpop.eup %5704 }
 0x422   :  { %4135 = vadd.xlane.f32.xlu1 %v6686_v15 }
 0x423   :  { %v6689_v14 = vpop.eup %5706 }
 0x424   :  { %4137 = vadd.xlane.f32.xlu0 %v6689_v14 }
 0x425   :  { %v6692_v44 = vpop.eup %5708 }
 0x426   :  { %4139 = vadd.xlane.f32.xlu1 %v6692_v44 }
 0x47c   :  { %v4114_v13 = vpop.xlane.xlu0 %4113 }
 0x47d   :  { %5710 = vrcp.f32 %v4114_v13 }
 0x480   :  { %v4116_v46 = vpop.xlane.xlu1 %4115  ;;  %v4110_v47 = vpop.xlane.xlu0 %4109 }
 0x481   :  { %5712 = vrcp.f32 %v4116_v46 }
 0x482   :  { %5714 = vrcp.f32 %v4110_v47 }
 0x484   :  { %v4112_v53 = vpop.xlane.xlu1 %4111 }
 0x485   :  { %5716 = vrcp.f32 %v4112_v53 }
 0x487   :  { %v5711_v48 = vpop.eup %5710 }
 0x488   :  { %v4159_v16 = vmul.f32 %v5711_v48, %v6637_v40 }
 0x48a   :  { %4175 = vst [vmem:[%s6764_s5 + $0x10] sm:$0xff] %v4159_v16 }
 0x48b   :  { %v5713_v24 = vpop.eup %5712 }
 0x48c   :  { %v5715_v17 = vpop.eup %5714  ;;  %v4160_v0 = vmul.f32 %v5713_v24, %v6642_v49  ;;  %v4122_v31 = vpop.xlane.xlu0 %4121 }
 0x48d   :  { %v4157_v12 = vmul.f32 %v5715_v17, %v6640_v28  ;;  %5718 = vrcp.f32 %v4122_v31 }
 0x48e   :  { %4176 = vst [vmem:[%s6764_s5 + $0x18] sm:$0xff] %v4160_v0  ;;  %v4124_v52 = vpop.xlane.xlu1 %4123 }
 0x48f   :  { %v5717_v45 = vpop.eup %5716  ;;  %4173 = vst [vmem:[%s6764_s5] sm:$0xff] %v4157_v12  ;;  %5720 = vrcp.f32 %v4124_v52 }
 0x490   :  { %v4158_v40 = vmul.f32 %v5717_v45, %v6647_v60  ;;  %v4118_v27 = vpop.xlane.xlu0 %4117 }
 0x491   :  { %5722 = vrcp.f32 %v4118_v27 }
 0x492   :  { %4174 = vst [vmem:[%s6764_s5 + $0x8] sm:$0xff] %v4158_v40  ;;  %v4120_v28 = vpop.xlane.xlu1 %4119 }
 0x493   :  { %5724 = vrcp.f32 %v4120_v28 }
 0x497   :  { %v5719_v29 = vpop.eup %5718 }
 0x498   :  { %v4163_v49 = vmul.f32 %v5719_v29, %v6651_v1 }
 0x499   :  { %v5721_v54 = vpop.eup %5720 }
 0x49a   :  { %4179 = vst [vmem:[%s6764_s5 + $0x30] sm:$0xff] %v4163_v49  ;;  %v4164_v9 = vmul.f32 %v5721_v54, %v6654_v4 }
 0x49b   :  { %v5723_v22 = vpop.eup %5722 }
 0x49c   :  { %4180 = vst [vmem:[%s6764_s5 + $0x38] sm:$0xff] %v4164_v9  ;;  %v4161_v10 = vmul.f32 %v5723_v22, %v6658_v11  ;;  %v4130_v57 = vpop.xlane.xlu0 %4129 }
 0x49d   :  { %v5725_v6 = vpop.eup %5724  ;;  %5726 = vrcp.f32 %v4130_v57 }
 0x49e   :  { %4177 = vst [vmem:[%s6764_s5 + $0x20] sm:$0xff] %v4161_v10  ;;  %v4162_v60 = vmul.f32 %v5725_v6, %v6662_v3  ;;  %v4132_v7 = vpop.xlane.xlu1 %4131 }
 0x49f   :  { %5728 = vrcp.f32 %v4132_v7 }
 0x4a0   :  { %4178 = vst [vmem:[%s6764_s5 + $0x28] sm:$0xff] %v4162_v60  ;;  %v4126_v59 = vpop.xlane.xlu0 %4125 }
 0x4a1   :  { %5730 = vrcp.f32 %v4126_v59 }
 0x4a2   :  { %v4128_v20 = vpop.xlane.xlu1 %4127 }
 0x4a3   :  { %5732 = vrcp.f32 %v4128_v20 }
 0x4a7   :  { %v5727_v1 = vpop.eup %5726 }
 0x4a8   :  { %v4167_v26 = vmul.f32 %v5727_v1, %v6667_v8 }
 0x4a9   :  { %v5729_v4 = vpop.eup %5728 }
 0x4aa   :  { %4183 = vst [vmem:[%s6764_s5 + $0x50] sm:$0xff] %v4167_v26  ;;  %v4168_v18 = vmul.f32 %v5729_v4, %v6670_v34 }
 0x4ab   :  { %v5731_v33 = vpop.eup %5730 }
 0x4ac   :  { %4184 = vst [vmem:[%s6764_s5 + $0x58] sm:$0xff] %v4168_v18  ;;  %v4165_v11 = vmul.f32 %v5731_v33, %v6674_v63 }
 0x4ad   :  { %v5733_v21 = vpop.eup %5732  ;;  %v4134_v55 = vpop.xlane.xlu0 %4133 }
 0x4ae   :  { %4181 = vst [vmem:[%s6764_s5 + $0x40] sm:$0xff] %v4165_v11  ;;  %v4166_v37 = vmul.f32 %v5733_v21, %v6678_v30  ;;  %5734 = vrcp.f32 %v4134_v55 }
 0x4af   :  { %v4136_v3 = vpop.xlane.xlu1 %4135 }
 0x4b0   :  { %4182 = vst [vmem:[%s6764_s5 + $0x48] sm:$0xff] %v4166_v37  ;;  %5736 = vrcp.f32 %v4136_v3 }
 0x4b1   :  { %v4138_v50 = vpop.xlane.xlu0 %4137 }
 0x4b2   :  { %5738 = vrcp.f32 %v4138_v50 }
 0x4b3   :  { %v4140_v41 = vpop.xlane.xlu1 %4139 }
 0x4b4   :  { %5740 = vrcp.f32 %v4140_v41 }
 0x4b8   :  { %v5735_v51 = vpop.eup %5734 }
 0x4b9   :  { %v4169_v61 = vmul.f32 %v5735_v51, %v6683_v56 }
 0x4ba   :  { %v5737_v42 = vpop.eup %5736 }
 0x4bb   :  { %4185 = vst [vmem:[%s6764_s5 + $0x60] sm:$0xff] %v4169_v61  ;;  %v4170_v2 = vmul.f32 %v5737_v42, %v6686_v15 }
 0x4bc   :  { %v5739_v8 = vpop.eup %5738 }
 0x4bd   :  { %4186 = vst [vmem:[%s6764_s5 + $0x68] sm:$0xff] %v4170_v2  ;;  %v4171_v34 = vmul.f32 %v5739_v8, %v6689_v14 }
 0x4be   :  { %v5741_v23 = vpop.eup %5740 }
 0x4bf   :  { %4187 = vst [vmem:[%s6764_s5 + $0x70] sm:$0xff] %v4171_v34  ;;  %v4172_v38 = vmul.f32 %v5741_v23, %v6692_v44 }
 0x4c1   :  { %4188 = vst [vmem:[%s6764_s5 + $0x78] sm:$0xff] %v4172_v38 }
 0x4c2   :  { %4193 = vsyncpa [#allocation3], 1 }

</bundles_post_ra>
